<compile_context>
chip_gen: v7x
topology: tpu7x:2x2x1
jax: 0.10.0
libtpu: 0.0.40
codegen_flags: <defaults>
</compile_context>

<pallas_src>
import math
from functools import partial

import jax
import jax.numpy as jnp
from jax import lax
from jax.experimental import pallas as pl
from jax.experimental.pallas import tpu as pltpu


# ----------------------------------------------------------------------------
# shared math
# ----------------------------------------------------------------------------
def _layernorm(x, w, b, eps):
    mu = jnp.mean(x, axis=-1, keepdims=True)
    var = jnp.mean(jnp.square(x - mu), axis=-1, keepdims=True)
    return (x - mu) * lax.rsqrt(var + eps) * w + b


# ----------------------------------------------------------------------------
# kernels
# ----------------------------------------------------------------------------
def _pos_add_kernel(x_ref, pos_ref, o_ref):
    o_ref[...] = x_ref[...] + pos_ref[...]


def _final_ln_kernel(x_ref, w_ref, b_ref, o_ref, *, eps):
    x = x_ref[...].astype(jnp.float32)
    w = w_ref[...].astype(jnp.float32)
    b = b_ref[...].astype(jnp.float32)
    o_ref[...] = _layernorm(x, w, b, eps).astype(o_ref.dtype)


def _encoder_block_kernel(x_ref,
                          ln1w_ref, ln1b_ref,
                          wq_ref, bq_ref, wk_ref, bk_ref, wv_ref, bv_ref,
                          wo_ref, bo_ref,
                          ln2w_ref, ln2b_ref,
                          w1_ref, b1_ref, w2_ref, b2_ref,
                          o_ref,
                          *, num_heads, eps):
    f32 = jnp.float32
    bf16 = jnp.bfloat16

    x = x_ref[...].astype(f32)                              # (S, D)
    S, D = x.shape
    H = num_heads
    hd = D // H
    scale = 1.0 / math.sqrt(hd)

    # ---- hoist small params into f32 locals (loaded exactly once) ----
    ln1w = ln1w_ref[...].astype(f32)
    ln1b = ln1b_ref[...].astype(f32)
    ln2w = ln2w_ref[...].astype(f32)
    ln2b = ln2b_ref[...].astype(f32)
    bq = bq_ref[...].astype(f32)                            # (H, 1, hd)
    bk = bk_ref[...].astype(f32)
    bv = bv_ref[...].astype(f32)
    bo = bo_ref[...].astype(f32)                            # (1, D)
    b1 = b1_ref[...].astype(f32)                            # (1, M)
    b2 = b2_ref[...].astype(f32)                            # (1, D)

    # ---- LN1 (f32 stats) ----
    x0 = _layernorm(x, ln1w, ln1b, eps)
    x0b = jnp.broadcast_to(x0.astype(bf16)[None], (H, S, D))       # (H, S, D)

    # ---- head-batched QKV projections: bf16 in, f32 acc ----
    q = jnp.einsum('hsd,hde->hse', x0b, wq_ref[...],
                   preferred_element_type=f32) + bq                # (H, S, hd)
    k = jnp.einsum('hsd,hde->hse', x0b, wk_ref[...],
                   preferred_element_type=f32) + bk
    v = jnp.einsum('hsd,hde->hse', x0b, wv_ref[...],
                   preferred_element_type=f32) + bv

    # scale q (S*hd muls) instead of the (S,S) score matrix
    qb = (q * scale).astype(bf16)
    kb = k.astype(bf16)
    vb = v.astype(bf16)

    # ---- attention: batched over heads ----
    s = jnp.einsum('hqe,hke->hqk', qb, kb,
                   preferred_element_type=f32)                     # (H, S, S)
    s = s - jnp.max(s, axis=-1, keepdims=True)
    p = jnp.exp(s)
    denom = jnp.sum(p, axis=-1, keepdims=True)
    p = p * pl.reciprocal(denom, approx=True)

    ctx = jnp.einsum('hqk,hke->hqe', p.astype(bf16), vb,
                     preferred_element_type=f32)                   # (H, S, hd)

    # ---- output projection: x1 = sum_h ctx[h] @ wo[h] (no concat/transpose)
    per_head = jnp.einsum('hqe,hed->hqd', ctx.astype(bf16), wo_ref[...],
                          preferred_element_type=f32)              # (H, S, D)
    x1 = per_head[0]
    for h in range(1, H):
        x1 = x1 + per_head[h]
    x1 = x1 + bo

    # ---- residual 1 (f32) ----
    x2 = x + x1

    # ---- LN2 + MLP: Linear -> GELU(exact erf) -> Linear  (dropout = 0) ----
    x3 = _layernorm(x2, ln2w, ln2b, eps)
    h1 = jnp.dot(x3.astype(bf16), w1_ref[...],
                 preferred_element_type=f32) + b1                  # (S, M)
    g = 0.5 * h1 * (1.0 + lax.erf(h1 * (1.0 / math.sqrt(2.0))))
    x4 = jnp.dot(g.astype(bf16), w2_ref[...],
                 preferred_element_type=f32) + b2                  # (S, D)

    # ---- residual 2 ----
    o_ref[...] = (x2 + x4).astype(o_ref.dtype)


# ----------------------------------------------------------------------------
# pallas_call wrappers
# ----------------------------------------------------------------------------
_COMPILER_PARAMS = pltpu.CompilerParams(
    dimension_semantics=("parallel",),
    vmem_limit_bytes=64 * 1024 * 1024,
)


def _const_spec(arr):
    nd = arr.ndim
    return pl.BlockSpec(arr.shape, lambda b, _n=nd: (0,) * _n)


def _pos_add_call(x, pos):
    B, S, D = x.shape
    return pl.pallas_call(
        _pos_add_kernel,
        out_shape=jax.ShapeDtypeStruct((B, S, D), x.dtype),
        grid_spec=pltpu.PrefetchScalarGridSpec(
            num_scalar_prefetch=0,
            grid=(B,),
            in_specs=[pl.BlockSpec((None, S, D), lambda b: (b, 0, 0)),
                      pl.BlockSpec((None, S, D), lambda b: (0, 0, 0))],
            out_specs=pl.BlockSpec((None, S, D), lambda b: (b, 0, 0)),
        ),
        compiler_params=_COMPILER_PARAMS,
    )(x, pos)


def _encoder_block_call(x, p, num_heads, eps):
    B, S, D = x.shape
    in_specs = [
        pl.BlockSpec((None, S, D), lambda b: (b, 0, 0)),     # x
        _const_spec(p["ln1_w"]), _const_spec(p["ln1_b"]),
        _const_spec(p["wq"]), _const_spec(p["bq"]),
        _const_spec(p["wk"]), _const_spec(p["bk"]),
        _const_spec(p["wv"]), _const_spec(p["bv"]),
        _const_spec(p["wo"]), _const_spec(p["bo"]),
        _const_spec(p["ln2_w"]), _const_spec(p["ln2_b"]),
        _const_spec(p["w1"]), _const_spec(p["b1"]),
        _const_spec(p["w2"]), _const_spec(p["b2"]),
    ]
    return pl.pallas_call(
        partial(_encoder_block_kernel, num_heads=num_heads, eps=eps),
        out_shape=jax.ShapeDtypeStruct((B, S, D), x.dtype),
        grid_spec=pltpu.PrefetchScalarGridSpec(
            num_scalar_prefetch=0,
            grid=(B,),
            in_specs=in_specs,
            out_specs=pl.BlockSpec((None, S, D), lambda b: (b, 0, 0)),
        ),
        compiler_params=_COMPILER_PARAMS,
    )(x,
      p["ln1_w"], p["ln1_b"],
      p["wq"], p["bq"], p["wk"], p["bk"], p["wv"], p["bv"],
      p["wo"], p["bo"],
      p["ln2_w"], p["ln2_b"],
      p["w1"], p["b1"], p["w2"], p["b2"])


def _final_ln_call(x, w, b, eps):
    B, S, D = x.shape
    return pl.pallas_call(
        partial(_final_ln_kernel, eps=eps),
        out_shape=jax.ShapeDtypeStruct((B, S, D), x.dtype),
        grid_spec=pltpu.PrefetchScalarGridSpec(
            num_scalar_prefetch=0,
            grid=(B,),
            in_specs=[pl.BlockSpec((None, S, D), lambda b: (b, 0, 0)),
                      _const_spec(w), _const_spec(b)],
            out_specs=pl.BlockSpec((None, S, D), lambda b: (b, 0, 0)),
        ),
        compiler_params=_COMPILER_PARAMS,
    )(x, w, b)


def encoder_pallas(x, pos, layer_params, final_ln, *, num_heads, eps=1e-6):
    """Full Encoder forward: pos-embed add -> N blocks -> final LayerNorm."""
    x = _pos_add_call(x, pos)
    for p in layer_params:
        x = _encoder_block_call(x, p, num_heads, eps)
    return _final_ln_call(x, final_ln["w"], final_ln["b"], eps)


# ----------------------------------------------------------------------------
# pure-JAX reference (same math, f32 everywhere, same bf16 weight values)
# ----------------------------------------------------------------------------
def _encoder_block_ref(x, p, num_heads, eps=1e-6):
    f32 = jnp.float32
    D = x.shape[-1]
    hd = D // num_heads
    x0 = _layernorm(x, p["ln1_w"], p["ln1_b"], eps)
    q = jnp.einsum('bsd,hde->bhse', x0, p["wq"].astype(f32)) + p["bq"][None]
    k = jnp.einsum('bsd,hde->bhse', x0, p["wk"].astype(f32)) + p["bk"][None]
    v = jnp.einsum('bsd,hde->bhse', x0, p["wv"].astype(f32)) + p["bv"][None]
    s = jnp.einsum('bhqe,bhke->bhqk', q, k) / math.sqrt(hd)
    a = jax.nn.softmax(s, axis=-1)
    ctx = jnp.einsum('bhqk,bhke->bhqe', a, v)
    x1 = jnp.einsum('bhqe,hed->bqd', ctx, p["wo"].astype(f32)) + p["bo"]
    x2 = x + x1
    x3 = _layernorm(x2, p["ln2_w"], p["ln2_b"], eps)
    h1 = x3 @ p["w1"].astype(f32) + p["b1"]
    g = 0.5 * h1 * (1.0 + lax.erf(h1 / math.sqrt(2.0)))
    x4 = g @ p["w2"].astype(f32) + p["b2"]
    return x2 + x4


def encoder_ref(x, pos, layer_params, final_ln, num_heads, eps=1e-6):
    x = x + pos
    for p in layer_params:
        x = _encoder_block_ref(x, p, num_heads, eps)
    return _layernorm(x, final_ln["w"], final_ln["b"], eps)


# ----------------------------------------------------------------------------
# parameter construction (head-major, bf16 matmul weights)
# ----------------------------------------------------------------------------
def make_encoder_params(key, seq_length, num_layers, num_heads, hidden_dim, mlp_dim):
    hd = hidden_dim // num_heads

    def n(k, shape, dtype=jnp.float32):
        return (0.02 * jax.random.normal(k, shape, dtype=jnp.float32)).astype(dtype)

    keys = jax.random.split(key, num_layers + 1)
    pos = n(keys[0], (1, seq_length, hidden_dim))

    layers = []
    for i in range(num_layers):
        ks = jax.random.split(keys[i + 1], 12)
        layers.append({
            "ln1_w": jnp.ones((1, hidden_dim), jnp.float32),
            "ln1_b": jnp.zeros((1, hidden_dim), jnp.float32),
            "wq": n(ks[0], (num_heads, hidden_dim, hd), jnp.bfloat16),
            "bq": n(ks[1], (num_heads, 1, hd)),
            "wk": n(ks[2], (num_heads, hidden_dim, hd), jnp.bfloat16),
            "bk": n(ks[3], (num_heads, 1, hd)),
            "wv": n(ks[4], (num_heads, hidden_dim, hd), jnp.bfloat16),
            "bv": n(ks[5], (num_heads, 1, hd)),
            "wo": n(ks[6], (num_heads, hd, hidden_dim), jnp.bfloat16),
            "bo": n(ks[7], (1, hidden_dim)),
            "ln2_w": jnp.ones((1, hidden_dim), jnp.float32),
            "ln2_b": jnp.zeros((1, hidden_dim), jnp.float32),
            "w1": n(ks[8], (hidden_dim, mlp_dim), jnp.bfloat16),
            "b1": n(ks[9], (1, mlp_dim)),
            "w2": n(ks[10], (mlp_dim, hidden_dim), jnp.bfloat16),
            "b2": n(ks[11], (1, hidden_dim)),
        })

    final_ln = {"w": jnp.ones((1, hidden_dim), jnp.float32),
                "b": jnp.zeros((1, hidden_dim), jnp.float32)}
    return pos, layers, final_ln


# ----------------------------------------------------------------------------
# demo / correctness check
# ----------------------------------------------------------------------------
if __name__ == "__main__":
    B, S, D = 2, 8, 32
    num_heads = 4
    mlp_dim = 64
    num_layers = 2

    key = jax.random.PRNGKey(0)
    kx, kp = jax.random.split(key)
    x = jax.random.normal(kx, (B, S, D), dtype=jnp.float32)
    pos, layers, final_ln = make_encoder_params(kp, S, num_layers, num_heads, D, mlp_dim)

    fwd = jax.jit(partial(encoder_pallas, num_heads=num_heads))
    out = fwd(x, pos, layers, final_ln)
    out = jax.block_until_ready(out)

    ref = encoder_ref(x, pos, layers, final_ln, num_heads)
    assert out.shape == (B, S, D)
    max_err = float(jnp.max(jnp.abs(out - ref)))
    # bf16 MXU inputs + approx reciprocal -> relaxed (but still tight) tolerance
    assert jnp.allclose(out, ref, atol=3e-2, rtol=3e-2), \
        f"mismatch vs reference, max abs err = {max_err}"

    print("KERNEL_OK")
</pallas_src>

<mosaic_0001>
module attributes {stable_mosaic.version = 11 : i64} {
  func.func @_pos_add_kernel(%arg0: i32, %arg1: memref<1x8x32xf32, #tpu.memory_space<vmem>>, %arg2: memref<1x8x32xf32, #tpu.memory_space<vmem>>, %arg3: memref<1x8x32xf32, #tpu.memory_space<vmem>>) attributes {dimension_semantics = [#tpu.dimension_semantics<parallel>], iteration_bounds = array<i64: 2>, scalar_prefetch = 0 : i64, scratch_operands = 0 : i64, tpu.core_type = #tpu.core_type<tc>, window_params = [{transform_indices = @transform_0, window_bounds = array<i64: 1, 8, 32>}, {pipeline_mode = #tpu.pipeline_mode<synchronous>, transform_indices = @transform_1, window_bounds = array<i64: 1, 8, 32>}, {transform_indices = @transform_2, window_bounds = array<i64: 1, 8, 32>}]} {
    %c0 = arith.constant 0 : index
    %c0_0 = arith.constant 0 : index
    %c0_1 = arith.constant 0 : index
    %0 = vector.load %arg1[%c0, %c0_0, %c0_1] : memref<1x8x32xf32, #tpu.memory_space<vmem>>, vector<1x8x32xf32>
    %1 = vector.shape_cast %0 : vector<1x8x32xf32> to vector<8x32xf32>
    %c0_2 = arith.constant 0 : index
    %c0_3 = arith.constant 0 : index
    %c0_4 = arith.constant 0 : index
    %2 = vector.load %arg2[%c0_2, %c0_3, %c0_4] : memref<1x8x32xf32, #tpu.memory_space<vmem>>, vector<1x8x32xf32>
    %3 = vector.shape_cast %2 : vector<1x8x32xf32> to vector<8x32xf32>
    %4 = arith.addf %1, %3 : vector<8x32xf32>
    %c0_5 = arith.constant 0 : index
    %c0_6 = arith.constant 0 : index
    %c0_7 = arith.constant 0 : index
    %5 = vector.load %arg3[%c0_5, %c0_6, %c0_7] : memref<1x8x32xf32, #tpu.memory_space<vmem>>, vector<1x8x32xf32>
    %6 = vector.shape_cast %5 : vector<1x8x32xf32> to vector<8x32xf32>
    %7 = vector.shape_cast %4 : vector<8x32xf32> to vector<1x8x32xf32>
    tpu.vector_store %arg3[%c0_5, %c0_6, %c0_7], %7 {strides = array<i32>} : memref<1x8x32xf32, #tpu.memory_space<vmem>>, vector<1x8x32xf32>,
    return
  }
  func.func @transform_0(%arg0: i32) -> (i32, i32, i32) {
    %c0_i32 = arith.constant 0 : i32
    %c0_i32_0 = arith.constant 0 : i32
    %c0_i32_1 = arith.constant 0 : i32
    return %arg0, %c0_i32, %c0_i32_0 : i32, i32, i32
  }
  func.func @transform_1(%arg0: i32) -> (i32, i32, i32) {
    %c0_i32 = arith.constant 0 : i32
    %c0_i32_0 = arith.constant 0 : i32
    %c0_i32_1 = arith.constant 0 : i32
    %c0_i32_2 = arith.constant 0 : i32
    return %c0_i32, %c0_i32_0, %c0_i32_1 : i32, i32, i32
  }
  func.func @transform_2(%arg0: i32) -> (i32, i32, i32) {
    %c0_i32 = arith.constant 0 : i32
    %c0_i32_0 = arith.constant 0 : i32
    %c0_i32_1 = arith.constant 0 : i32
    return %arg0, %c0_i32, %c0_i32_0 : i32, i32, i32
  }
}

module attributes {stable_mosaic.version = 11 : i64} {
  func.func @_encoder_block_kernel(%arg0: i32, %arg1: memref<1x8x32xf32, #tpu.memory_space<vmem>>, %arg2: memref<1x32xf32, #tpu.memory_space<vmem>>, %arg3: memref<1x32xf32, #tpu.memory_space<vmem>>, %arg4: memref<4x32x8xbf16, #tpu.memory_space<vmem>>, %arg5: memref<4x1x8xf32, #tpu.memory_space<vmem>>, %arg6: memref<4x32x8xbf16, #tpu.memory_space<vmem>>, %arg7: memref<4x1x8xf32, #tpu.memory_space<vmem>>, %arg8: memref<4x32x8xbf16, #tpu.memory_space<vmem>>, %arg9: memref<4x1x8xf32, #tpu.memory_space<vmem>>, %arg10: memref<4x8x32xbf16, #tpu.memory_space<vmem>>, %arg11: memref<1x32xf32, #tpu.memory_space<vmem>>, %arg12: memref<1x32xf32, #tpu.memory_space<vmem>>, %arg13: memref<1x32xf32, #tpu.memory_space<vmem>>, %arg14: memref<32x64xbf16, #tpu.memory_space<vmem>>, %arg15: memref<1x64xf32, #tpu.memory_space<vmem>>, %arg16: memref<64x32xbf16, #tpu.memory_space<vmem>>, %arg17: memref<1x32xf32, #tpu.memory_space<vmem>>, %arg18: memref<1x8x32xf32, #tpu.memory_space<vmem>>) attributes {dimension_semantics = [#tpu.dimension_semantics<parallel>], iteration_bounds = array<i64: 2>, scalar_prefetch = 0 : i64, scratch_operands = 0 : i64, tpu.core_type = #tpu.core_type<tc>, window_params = [{transform_indices = @transform_0, window_bounds = array<i64: 1, 8, 32>}, {pipeline_mode = #tpu.pipeline_mode<synchronous>, transform_indices = @transform_1, window_bounds = array<i64: 1, 32>}, {pipeline_mode = #tpu.pipeline_mode<synchronous>, transform_indices = @transform_2, window_bounds = array<i64: 1, 32>}, {pipeline_mode = #tpu.pipeline_mode<synchronous>, transform_indices = @transform_3, window_bounds = array<i64: 4, 32, 8>}, {pipeline_mode = #tpu.pipeline_mode<synchronous>, transform_indices = @transform_4, window_bounds = array<i64: 4, 1, 8>}, {pipeline_mode = #tpu.pipeline_mode<synchronous>, transform_indices = @transform_5, window_bounds = array<i64: 4, 32, 8>}, {pipeline_mode = #tpu.pipeline_mode<synchronous>, transform_indices = @transform_6, window_bounds = array<i64: 4, 1, 8>}, {pipeline_mode = #tpu.pipeline_mode<synchronous>, transform_indices = @transform_7, window_bounds = array<i64: 4, 32, 8>}, {pipeline_mode = #tpu.pipeline_mode<synchronous>, transform_indices = @transform_8, window_bounds = array<i64: 4, 1, 8>}, {pipeline_mode = #tpu.pipeline_mode<synchronous>, transform_indices = @transform_9, window_bounds = array<i64: 4, 8, 32>}, {pipeline_mode = #tpu.pipeline_mode<synchronous>, transform_indices = @transform_10, window_bounds = array<i64: 1, 32>}, {pipeline_mode = #tpu.pipeline_mode<synchronous>, transform_indices = @transform_11, window_bounds = array<i64: 1, 32>}, {pipeline_mode = #tpu.pipeline_mode<synchronous>, transform_indices = @transform_12, window_bounds = array<i64: 1, 32>}, {pipeline_mode = #tpu.pipeline_mode<synchronous>, transform_indices = @transform_13, window_bounds = array<i64: 32, 64>}, {pipeline_mode = #tpu.pipeline_mode<synchronous>, transform_indices = @transform_14, window_bounds = array<i64: 1, 64>}, {pipeline_mode = #tpu.pipeline_mode<synchronous>, transform_indices = @transform_15, window_bounds = array<i64: 64, 32>}, {pipeline_mode = #tpu.pipeline_mode<synchronous>, transform_indices = @transform_16, window_bounds = array<i64: 1, 32>}, {transform_indices = @transform_17, window_bounds = array<i64: 1, 8, 32>}]} {
    %c0 = arith.constant 0 : index
    %c0_0 = arith.constant 0 : index
    %c0_1 = arith.constant 0 : index
    %0 = vector.load %arg1[%c0, %c0_0, %c0_1] : memref<1x8x32xf32, #tpu.memory_space<vmem>>, vector<1x8x32xf32>
    %1 = vector.shape_cast %0 : vector<1x8x32xf32> to vector<8x32xf32>
    %c0_2 = arith.constant 0 : index
    %c0_3 = arith.constant 0 : index
    %2 = vector.load %arg2[%c0_2, %c0_3] : memref<1x32xf32, #tpu.memory_space<vmem>>, vector<1x32xf32>
    %c0_4 = arith.constant 0 : index
    %c0_5 = arith.constant 0 : index
    %3 = vector.load %arg3[%c0_4, %c0_5] : memref<1x32xf32, #tpu.memory_space<vmem>>, vector<1x32xf32>
    %c0_6 = arith.constant 0 : index
    %c0_7 = arith.constant 0 : index
    %4 = vector.load %arg12[%c0_6, %c0_7] : memref<1x32xf32, #tpu.memory_space<vmem>>, vector<1x32xf32>
    %c0_8 = arith.constant 0 : index
    %c0_9 = arith.constant 0 : index
    %5 = vector.load %arg13[%c0_8, %c0_9] : memref<1x32xf32, #tpu.memory_space<vmem>>, vector<1x32xf32>
    %c0_10 = arith.constant 0 : index
    %c0_11 = arith.constant 0 : index
    %c0_12 = arith.constant 0 : index
    %6 = vector.load %arg5[%c0_10, %c0_11, %c0_12] : memref<4x1x8xf32, #tpu.memory_space<vmem>>, vector<4x1x8xf32>
    %c0_13 = arith.constant 0 : index
    %c0_14 = arith.constant 0 : index
    %c0_15 = arith.constant 0 : index
    %7 = vector.load %arg7[%c0_13, %c0_14, %c0_15] : memref<4x1x8xf32, #tpu.memory_space<vmem>>, vector<4x1x8xf32>
    %c0_16 = arith.constant 0 : index
    %c0_17 = arith.constant 0 : index
    %c0_18 = arith.constant 0 : index
    %8 = vector.load %arg9[%c0_16, %c0_17, %c0_18] : memref<4x1x8xf32, #tpu.memory_space<vmem>>, vector<4x1x8xf32>
    %c0_19 = arith.constant 0 : index
    %c0_20 = arith.constant 0 : index
    %9 = vector.load %arg11[%c0_19, %c0_20] : memref<1x32xf32, #tpu.memory_space<vmem>>, vector<1x32xf32>
    %c0_21 = arith.constant 0 : index
    %c0_22 = arith.constant 0 : index
    %10 = vector.load %arg15[%c0_21, %c0_22] : memref<1x64xf32, #tpu.memory_space<vmem>>, vector<1x64xf32>
    %c0_23 = arith.constant 0 : index
    %c0_24 = arith.constant 0 : index
    %11 = vector.load %arg17[%c0_23, %c0_24] : memref<1x32xf32, #tpu.memory_space<vmem>>, vector<1x32xf32>
    %cst = arith.constant dense<0.000000e+00> : vector<8xf32>
    %12 = vector.multi_reduction <add>, %1, %cst [1] : vector<8x32xf32> to vector<8xf32>
    %13 = vector.shape_cast %12 : vector<8xf32> to vector<8x1xf32>
    %cst_25 = arith.constant 3.200000e+01 : f32
    %14 = vector.broadcast %cst_25 : f32 to vector<8x1xf32>
    %15 = arith.divf %13, %14 : vector<8x1xf32>
    %16 = vector.broadcast %15 : vector<8x1xf32> to vector<8x32xf32>
    %17 = arith.subf %1, %16 : vector<8x32xf32>
    %18 = arith.mulf %17, %17 : vector<8x32xf32>
    %cst_26 = arith.constant dense<0.000000e+00> : vector<8xf32>
    %19 = vector.multi_reduction <add>, %18, %cst_26 [1] : vector<8x32xf32> to vector<8xf32>
    %20 = vector.shape_cast %19 : vector<8xf32> to vector<8x1xf32>
    %cst_27 = arith.constant 3.200000e+01 : f32
    %21 = vector.broadcast %cst_27 : f32 to vector<8x1xf32>
    %22 = arith.divf %20, %21 : vector<8x1xf32>
    %23 = vector.broadcast %15 : vector<8x1xf32> to vector<8x32xf32>
    %24 = arith.subf %1, %23 : vector<8x32xf32>
    %cst_28 = arith.constant 9.99999997E-7 : f32
    %25 = vector.broadcast %cst_28 : f32 to vector<8x1xf32>
    %26 = arith.addf %22, %25 : vector<8x1xf32>
    %27 = math.rsqrt %26 : vector<8x1xf32>
    %28 = vector.broadcast %27 : vector<8x1xf32> to vector<8x32xf32>
    %29 = arith.mulf %24, %28 : vector<8x32xf32>
    %30 = vector.broadcast %2 : vector<1x32xf32> to vector<8x32xf32>
    %31 = arith.mulf %29, %30 : vector<8x32xf32>
    %32 = vector.broadcast %3 : vector<1x32xf32> to vector<8x32xf32>
    %33 = arith.addf %31, %32 : vector<8x32xf32>
    %34 = arith.truncf %33 : vector<8x32xf32> to vector<8x32xbf16>
    %35 = vector.shape_cast %34 : vector<8x32xbf16> to vector<1x8x32xbf16>
    %36 = vector.shape_cast %35 : vector<1x8x32xbf16> to vector<1x8x32xbf16>
    %37 = vector.broadcast %36 : vector<1x8x32xbf16> to vector<4x8x32xbf16>
    %c0_29 = arith.constant 0 : index
    %c0_30 = arith.constant 0 : index
    %c0_31 = arith.constant 0 : index
    %38 = vector.load %arg4[%c0_29, %c0_30, %c0_31] : memref<4x32x8xbf16, #tpu.memory_space<vmem>>, vector<4x32x8xbf16>
    "tpu.trace_start"() <{level = 10 : i32, message = "hsd,hde->hse"}> : () -> ()
    %cst_32 = arith.constant dense<0.000000e+00> : vector<4x8x8xf32>
    %39 = tpu.matmul %37, %38, %cst_32 {dimension_numbers = #tpu.dot_dimension_numbers<[2], [1], [1], [2], [0, 0, 0, 1, 1, 2], [0], [0]>} : vector<4x8x32xbf16>, vector<4x32x8xbf16>, vector<4x8x8xf32> -> vector<4x8x8xf32>
    "tpu.trace_stop"() : () -> ()
    %40 = vector.broadcast %6 : vector<4x1x8xf32> to vector<4x8x8xf32>
    %41 = arith.addf %39, %40 : vector<4x8x8xf32>
    %c0_33 = arith.constant 0 : index
    %c0_34 = arith.constant 0 : index
    %c0_35 = arith.constant 0 : index
    %42 = vector.load %arg6[%c0_33, %c0_34, %c0_35] : memref<4x32x8xbf16, #tpu.memory_space<vmem>>, vector<4x32x8xbf16>
    "tpu.trace_start"() <{level = 10 : i32, message = "hsd,hde->hse"}> : () -> ()
    %cst_36 = arith.constant dense<0.000000e+00> : vector<4x8x8xf32>
    %43 = tpu.matmul %37, %42, %cst_36 {dimension_numbers = #tpu.dot_dimension_numbers<[2], [1], [1], [2], [0, 0, 0, 1, 1, 2], [0], [0]>} : vector<4x8x32xbf16>, vector<4x32x8xbf16>, vector<4x8x8xf32> -> vector<4x8x8xf32>
    "tpu.trace_stop"() : () -> ()
    %44 = vector.broadcast %7 : vector<4x1x8xf32> to vector<4x8x8xf32>
    %45 = arith.addf %43, %44 : vector<4x8x8xf32>
    %c0_37 = arith.constant 0 : index
    %c0_38 = arith.constant 0 : index
    %c0_39 = arith.constant 0 : index
    %46 = vector.load %arg8[%c0_37, %c0_38, %c0_39] : memref<4x32x8xbf16, #tpu.memory_space<vmem>>, vector<4x32x8xbf16>
    "tpu.trace_start"() <{level = 10 : i32, message = "hsd,hde->hse"}> : () -> ()
    %cst_40 = arith.constant dense<0.000000e+00> : vector<4x8x8xf32>
    %47 = tpu.matmul %37, %46, %cst_40 {dimension_numbers = #tpu.dot_dimension_numbers<[2], [1], [1], [2], [0, 0, 0, 1, 1, 2], [0], [0]>} : vector<4x8x32xbf16>, vector<4x32x8xbf16>, vector<4x8x8xf32> -> vector<4x8x8xf32>
    "tpu.trace_stop"() : () -> ()
    %48 = vector.broadcast %8 : vector<4x1x8xf32> to vector<4x8x8xf32>
    %49 = arith.addf %47, %48 : vector<4x8x8xf32>
    %cst_41 = arith.constant 0.353553385 : f32
    %50 = vector.broadcast %cst_41 : f32 to vector<4x8x8xf32>
    %51 = arith.mulf %41, %50 : vector<4x8x8xf32>
    %52 = arith.truncf %51 : vector<4x8x8xf32> to vector<4x8x8xbf16>
    %53 = arith.truncf %45 : vector<4x8x8xf32> to vector<4x8x8xbf16>
    %54 = arith.truncf %49 : vector<4x8x8xf32> to vector<4x8x8xbf16>
    "tpu.trace_start"() <{level = 10 : i32, message = "hqe,hke->hqk"}> : () -> ()
    %cst_42 = arith.constant dense<0.000000e+00> : vector<4x8x8xf32>
    %55 = tpu.matmul %52, %53, %cst_42 {dimension_numbers = #tpu.dot_dimension_numbers<[2], [2], [1], [1], [0, 0, 0, 1, 1, 1], [0], [0]>} : vector<4x8x8xbf16>, vector<4x8x8xbf16>, vector<4x8x8xf32> -> vector<4x8x8xf32>
    "tpu.trace_stop"() : () -> ()
    %cst_43 = arith.constant dense<0xFF800000> : vector<4x8xf32>
    %56 = vector.multi_reduction <maximumf>, %55, %cst_43 [2] : vector<4x8x8xf32> to vector<4x8xf32>
    %57 = vector.shape_cast %56 : vector<4x8xf32> to vector<4x8x1xf32>
    %58 = vector.broadcast %57 : vector<4x8x1xf32> to vector<4x8x8xf32>
    %59 = arith.subf %55, %58 : vector<4x8x8xf32>
    %60 = math.exp %59 : vector<4x8x8xf32>
    %cst_44 = arith.constant dense<0.000000e+00> : vector<4x8xf32>
    %61 = vector.multi_reduction <add>, %60, %cst_44 [2] : vector<4x8x8xf32> to vector<4x8xf32>
    %62 = vector.shape_cast %61 : vector<4x8xf32> to vector<4x8x1xf32>
    %63 = tpu.reciprocal %62 {approx = true} : vector<4x8x1xf32> -> vector<4x8x1xf32>
    %64 = vector.broadcast %63 : vector<4x8x1xf32> to vector<4x8x8xf32>
    %65 = arith.mulf %60, %64 : vector<4x8x8xf32>
    %66 = arith.truncf %65 : vector<4x8x8xf32> to vector<4x8x8xbf16>
    "tpu.trace_start"() <{level = 10 : i32, message = "hqk,hke->hqe"}> : () -> ()
    %cst_45 = arith.constant dense<0.000000e+00> : vector<4x8x8xf32>
    %67 = tpu.matmul %66, %54, %cst_45 {dimension_numbers = #tpu.dot_dimension_numbers<[2], [1], [1], [2], [0, 0, 0, 1, 1, 2], [0], [0]>} : vector<4x8x8xbf16>, vector<4x8x8xbf16>, vector<4x8x8xf32> -> vector<4x8x8xf32>
    "tpu.trace_stop"() : () -> ()
    %68 = arith.truncf %67 : vector<4x8x8xf32> to vector<4x8x8xbf16>
    %c0_46 = arith.constant 0 : index
    %c0_47 = arith.constant 0 : index
    %c0_48 = arith.constant 0 : index
    %69 = vector.load %arg10[%c0_46, %c0_47, %c0_48] : memref<4x8x32xbf16, #tpu.memory_space<vmem>>, vector<4x8x32xbf16>
    "tpu.trace_start"() <{level = 10 : i32, message = "hqe,hed->hqd"}> : () -> ()
    %cst_49 = arith.constant dense<0.000000e+00> : vector<4x8x32xf32>
    %70 = tpu.matmul %68, %69, %cst_49 {dimension_numbers = #tpu.dot_dimension_numbers<[2], [1], [1], [2], [0, 0, 0, 1, 1, 2], [0], [0]>} : vector<4x8x8xbf16>, vector<4x8x32xbf16>, vector<4x8x32xf32> -> vector<4x8x32xf32>
    "tpu.trace_stop"() : () -> ()
    %71 = vector.extract_strided_slice %70 {offsets = [0, 0, 0], sizes = [1, 8, 32], strides = [1, 1, 1]} : vector<4x8x32xf32> to vector<1x8x32xf32>
    %72 = vector.shape_cast %71 : vector<1x8x32xf32> to vector<8x32xf32>
    %73 = vector.extract_strided_slice %70 {offsets = [1, 0, 0], sizes = [1, 8, 32], strides = [1, 1, 1]} : vector<4x8x32xf32> to vector<1x8x32xf32>
    %74 = vector.shape_cast %73 : vector<1x8x32xf32> to vector<8x32xf32>
    %75 = arith.addf %72, %74 : vector<8x32xf32>
    %76 = vector.extract_strided_slice %70 {offsets = [2, 0, 0], sizes = [1, 8, 32], strides = [1, 1, 1]} : vector<4x8x32xf32> to vector<1x8x32xf32>
    %77 = vector.shape_cast %76 : vector<1x8x32xf32> to vector<8x32xf32>
    %78 = arith.addf %75, %77 : vector<8x32xf32>
    %79 = vector.extract_strided_slice %70 {offsets = [3, 0, 0], sizes = [1, 8, 32], strides = [1, 1, 1]} : vector<4x8x32xf32> to vector<1x8x32xf32>
    %80 = vector.shape_cast %79 : vector<1x8x32xf32> to vector<8x32xf32>
    %81 = arith.addf %78, %80 : vector<8x32xf32>
    %82 = vector.broadcast %9 : vector<1x32xf32> to vector<8x32xf32>
    %83 = arith.addf %81, %82 : vector<8x32xf32>
    %84 = arith.addf %1, %83 : vector<8x32xf32>
    %cst_50 = arith.constant dense<0.000000e+00> : vector<8xf32>
    %85 = vector.multi_reduction <add>, %84, %cst_50 [1] : vector<8x32xf32> to vector<8xf32>
    %86 = vector.shape_cast %85 : vector<8xf32> to vector<8x1xf32>
    %cst_51 = arith.constant 3.200000e+01 : f32
    %87 = vector.broadcast %cst_51 : f32 to vector<8x1xf32>
    %88 = arith.divf %86, %87 : vector<8x1xf32>
    %89 = vector.broadcast %88 : vector<8x1xf32> to vector<8x32xf32>
    %90 = arith.subf %84, %89 : vector<8x32xf32>
    %91 = arith.mulf %90, %90 : vector<8x32xf32>
    %cst_52 = arith.constant dense<0.000000e+00> : vector<8xf32>
    %92 = vector.multi_reduction <add>, %91, %cst_52 [1] : vector<8x32xf32> to vector<8xf32>
    %93 = vector.shape_cast %92 : vector<8xf32> to vector<8x1xf32>
    %cst_53 = arith.constant 3.200000e+01 : f32
    %94 = vector.broadcast %cst_53 : f32 to vector<8x1xf32>
    %95 = arith.divf %93, %94 : vector<8x1xf32>
    %96 = vector.broadcast %88 : vector<8x1xf32> to vector<8x32xf32>
    %97 = arith.subf %84, %96 : vector<8x32xf32>
    %cst_54 = arith.constant 9.99999997E-7 : f32
    %98 = vector.broadcast %cst_54 : f32 to vector<8x1xf32>
    %99 = arith.addf %95, %98 : vector<8x1xf32>
    %100 = math.rsqrt %99 : vector<8x1xf32>
    %101 = vector.broadcast %100 : vector<8x1xf32> to vector<8x32xf32>
    %102 = arith.mulf %97, %101 : vector<8x32xf32>
    %103 = vector.broadcast %4 : vector<1x32xf32> to vector<8x32xf32>
    %104 = arith.mulf %102, %103 : vector<8x32xf32>
    %105 = vector.broadcast %5 : vector<1x32xf32> to vector<8x32xf32>
    %106 = arith.addf %104, %105 : vector<8x32xf32>
    %107 = arith.truncf %106 : vector<8x32xf32> to vector<8x32xbf16>
    %c0_55 = arith.constant 0 : index
    %c0_56 = arith.constant 0 : index
    %108 = vector.load %arg14[%c0_55, %c0_56] : memref<32x64xbf16, #tpu.memory_space<vmem>>, vector<32x64xbf16>
    %cst_57 = arith.constant dense<0.000000e+00> : vector<8x64xf32>
    %109 = tpu.matmul %107, %108, %cst_57 {dimension_numbers = #tpu.dot_dimension_numbers<[1], [0], [0], [1], [0, 0, 1, 1], [], []>} : vector<8x32xbf16>, vector<32x64xbf16>, vector<8x64xf32> -> vector<8x64xf32>
    %110 = vector.broadcast %10 : vector<1x64xf32> to vector<8x64xf32>
    %111 = arith.addf %109, %110 : vector<8x64xf32>
    %cst_58 = arith.constant 5.000000e-01 : f32
    %112 = vector.broadcast %cst_58 : f32 to vector<8x64xf32>
    %113 = arith.mulf %112, %111 : vector<8x64xf32>
    %cst_59 = arith.constant 0.707106769 : f32
    %114 = vector.broadcast %cst_59 : f32 to vector<8x64xf32>
    %115 = arith.mulf %111, %114 : vector<8x64xf32>
    %116 = math.erf %115 : vector<8x64xf32>
    %cst_60 = arith.constant 1.000000e+00 : f32
    %117 = vector.broadcast %cst_60 : f32 to vector<8x64xf32>
    %118 = arith.addf %117, %116 : vector<8x64xf32>
    %119 = arith.mulf %113, %118 : vector<8x64xf32>
    %120 = arith.truncf %119 : vector<8x64xf32> to vector<8x64xbf16>
    %c0_61 = arith.constant 0 : index
    %c0_62 = arith.constant 0 : index
    %121 = vector.load %arg16[%c0_61, %c0_62] : memref<64x32xbf16, #tpu.memory_space<vmem>>, vector<64x32xbf16>
    %cst_63 = arith.constant dense<0.000000e+00> : vector<8x32xf32>
    %122 = tpu.matmul %120, %121, %cst_63 {dimension_numbers = #tpu.dot_dimension_numbers<[1], [0], [0], [1], [0, 0, 1, 1], [], []>} : vector<8x64xbf16>, vector<64x32xbf16>, vector<8x32xf32> -> vector<8x32xf32>
    %123 = vector.broadcast %11 : vector<1x32xf32> to vector<8x32xf32>
    %124 = arith.addf %122, %123 : vector<8x32xf32>
    %125 = arith.addf %84, %124 : vector<8x32xf32>
    %c0_64 = arith.constant 0 : index
    %c0_65 = arith.constant 0 : index
    %c0_66 = arith.constant 0 : index
    %126 = vector.load %arg18[%c0_64, %c0_65, %c0_66] : memref<1x8x32xf32, #tpu.memory_space<vmem>>, vector<1x8x32xf32>
    %127 = vector.shape_cast %126 : vector<1x8x32xf32> to vector<8x32xf32>
    %128 = vector.shape_cast %125 : vector<8x32xf32> to vector<1x8x32xf32>
    tpu.vector_store %arg18[%c0_64, %c0_65, %c0_66], %128 {strides = array<i32>} : memref<1x8x32xf32, #tpu.memory_space<vmem>>, vector<1x8x32xf32>,
    return
  }
  func.func @transform_0(%arg0: i32) -> (i32, i32, i32) {
    %c0_i32 = arith.constant 0 : i32
    %c0_i32_0 = arith.constant 0 : i32
    %c0_i32_1 = arith.constant 0 : i32
    return %arg0, %c0_i32, %c0_i32_0 : i32, i32, i32
  }
  func.func @transform_1(%arg0: i32) -> (i32, i32) {
    %c0_i32 = arith.constant 0 : i32
    %c0_i32_0 = arith.constant 0 : i32
    %c0_i32_1 = arith.constant 0 : i32
    return %c0_i32, %c0_i32_0 : i32, i32
  }
  func.func @transform_2(%arg0: i32) -> (i32, i32) {
    %c0_i32 = arith.constant 0 : i32
    %c0_i32_0 = arith.constant 0 : i32
    %c0_i32_1 = arith.constant 0 : i32
    return %c0_i32, %c0_i32_0 : i32, i32
  }
  func.func @transform_3(%arg0: i32) -> (i32, i32, i32) {
    %c0_i32 = arith.constant 0 : i32
    %c0_i32_0 = arith.constant 0 : i32
    %c0_i32_1 = arith.constant 0 : i32
    %c0_i32_2 = arith.constant 0 : i32
    return %c0_i32, %c0_i32_0, %c0_i32_1 : i32, i32, i32
  }
  func.func @transform_4(%arg0: i32) -> (i32, i32, i32) {
    %c0_i32 = arith.constant 0 : i32
    %c0_i32_0 = arith.constant 0 : i32
    %c0_i32_1 = arith.constant 0 : i32
    %c0_i32_2 = arith.constant 0 : i32
    return %c0_i32, %c0_i32_0, %c0_i32_1 : i32, i32, i32
  }
  func.func @transform_5(%arg0: i32) -> (i32, i32, i32) {
    %c0_i32 = arith.constant 0 : i32
    %c0_i32_0 = arith.constant 0 : i32
    %c0_i32_1 = arith.constant 0 : i32
    %c0_i32_2 = arith.constant 0 : i32
    return %c0_i32, %c0_i32_0, %c0_i32_1 : i32, i32, i32
  }
  func.func @transform_6(%arg0: i32) -> (i32, i32, i32) {
    %c0_i32 = arith.constant 0 : i32
    %c0_i32_0 = arith.constant 0 : i32
    %c0_i32_1 = arith.constant 0 : i32
    %c0_i32_2 = arith.constant 0 : i32
    return %c0_i32, %c0_i32_0, %c0_i32_1 : i32, i32, i32
  }
  func.func @transform_7(%arg0: i32) -> (i32, i32, i32) {
    %c0_i32 = arith.constant 0 : i32
    %c0_i32_0 = arith.constant 0 : i32
    %c0_i32_1 = arith.constant 0 : i32
    %c0_i32_2 = arith.constant 0 : i32
    return %c0_i32, %c0_i32_0, %c0_i32_1 : i32, i32, i32
  }
  func.func @transform_8(%arg0: i32) -> (i32, i32, i32) {
    %c0_i32 = arith.constant 0 : i32
    %c0_i32_0 = arith.constant 0 : i32
    %c0_i32_1 = arith.constant 0 : i32
    %c0_i32_2 = arith.constant 0 : i32
    return %c0_i32, %c0_i32_0, %c0_i32_1 : i32, i32, i32
  }
  func.func @transform_9(%arg0: i32) -> (i32, i32, i32) {
    %c0_i32 = arith.constant 0 : i32
    %c0_i32_0 = arith.constant 0 : i32
    %c0_i32_1 = arith.constant 0 : i32
    %c0_i32_2 = arith.constant 0 : i32
    return %c0_i32, %c0_i32_0, %c0_i32_1 : i32, i32, i32
  }
  func.func @transform_10(%arg0: i32) -> (i32, i32) {
    %c0_i32 = arith.constant 0 : i32
    %c0_i32_0 = arith.constant 0 : i32
    %c0_i32_1 = arith.constant 0 : i32
    return %c0_i32, %c0_i32_0 : i32, i32
  }
  func.func @transform_11(%arg0: i32) -> (i32, i32) {
    %c0_i32 = arith.constant 0 : i32
    %c0_i32_0 = arith.constant 0 : i32
    %c0_i32_1 = arith.constant 0 : i32
    return %c0_i32, %c0_i32_0 : i32, i32
  }
  func.func @transform_12(%arg0: i32) -> (i32, i32) {
    %c0_i32 = arith.constant 0 : i32
    %c0_i32_0 = arith.constant 0 : i32
    %c0_i32_1 = arith.constant 0 : i32
    return %c0_i32, %c0_i32_0 : i32, i32
  }
  func.func @transform_13(%arg0: i32) -> (i32, i32) {
    %c0_i32 = arith.constant 0 : i32
    %c0_i32_0 = arith.constant 0 : i32
    %c0_i32_1 = arith.constant 0 : i32
    return %c0_i32, %c0_i32_0 : i32, i32
  }
  func.func @transform_14(%arg0: i32) -> (i32, i32) {
    %c0_i32 = arith.constant 0 : i32
    %c0_i32_0 = arith.constant 0 : i32
    %c0_i32_1 = arith.constant 0 : i32
    return %c0_i32, %c0_i32_0 : i32, i32
  }
  func.func @transform_15(%arg0: i32) -> (i32, i32) {
    %c0_i32 = arith.constant 0 : i32
    %c0_i32_0 = arith.constant 0 : i32
    %c0_i32_1 = arith.constant 0 : i32
    return %c0_i32, %c0_i32_0 : i32, i32
  }
  func.func @transform_16(%arg0: i32) -> (i32, i32) {
    %c0_i32 = arith.constant 0 : i32
    %c0_i32_0 = arith.constant 0 : i32
    %c0_i32_1 = arith.constant 0 : i32
    return %c0_i32, %c0_i32_0 : i32, i32
  }
  func.func @transform_17(%arg0: i32) -> (i32, i32, i32) {
    %c0_i32 = arith.constant 0 : i32
    %c0_i32_0 = arith.constant 0 : i32
    %c0_i32_1 = arith.constant 0 : i32
    return %arg0, %c0_i32, %c0_i32_0 : i32, i32, i32
  }
}

module attributes {stable_mosaic.version = 11 : i64} {
  func.func @_final_ln_kernel(%arg0: i32, %arg1: memref<1x8x32xf32, #tpu.memory_space<vmem>>, %arg2: memref<1x32xf32, #tpu.memory_space<vmem>>, %arg3: memref<1x32xf32, #tpu.memory_space<vmem>>, %arg4: memref<1x8x32xf32, #tpu.memory_space<vmem>>) attributes {dimension_semantics = [#tpu.dimension_semantics<parallel>], iteration_bounds = array<i64: 2>, scalar_prefetch = 0 : i64, scratch_operands = 0 : i64, tpu.core_type = #tpu.core_type<tc>, window_params = [{transform_indices = @transform_0, window_bounds = array<i64: 1, 8, 32>}, {pipeline_mode = #tpu.pipeline_mode<synchronous>, transform_indices = @transform_1, window_bounds = array<i64: 1, 32>}, {pipeline_mode = #tpu.pipeline_mode<synchronous>, transform_indices = @transform_2, window_bounds = array<i64: 1, 32>}, {transform_indices = @transform_3, window_bounds = array<i64: 1, 8, 32>}]} {
    %c0 = arith.constant 0 : index
    %c0_0 = arith.constant 0 : index
    %c0_1 = arith.constant 0 : index
    %0 = vector.load %arg1[%c0, %c0_0, %c0_1] : memref<1x8x32xf32, #tpu.memory_space<vmem>>, vector<1x8x32xf32>
    %1 = vector.shape_cast %0 : vector<1x8x32xf32> to vector<8x32xf32>
    %c0_2 = arith.constant 0 : index
    %c0_3 = arith.constant 0 : index
    %2 = vector.load %arg2[%c0_2, %c0_3] : memref<1x32xf32, #tpu.memory_space<vmem>>, vector<1x32xf32>
    %c0_4 = arith.constant 0 : index
    %c0_5 = arith.constant 0 : index
    %3 = vector.load %arg3[%c0_4, %c0_5] : memref<1x32xf32, #tpu.memory_space<vmem>>, vector<1x32xf32>
    %cst = arith.constant dense<0.000000e+00> : vector<8xf32>
    %4 = vector.multi_reduction <add>, %1, %cst [1] : vector<8x32xf32> to vector<8xf32>
    %5 = vector.shape_cast %4 : vector<8xf32> to vector<8x1xf32>
    %cst_6 = arith.constant 3.200000e+01 : f32
    %6 = vector.broadcast %cst_6 : f32 to vector<8x1xf32>
    %7 = arith.divf %5, %6 : vector<8x1xf32>
    %8 = vector.broadcast %7 : vector<8x1xf32> to vector<8x32xf32>
    %9 = arith.subf %1, %8 : vector<8x32xf32>
    %10 = arith.mulf %9, %9 : vector<8x32xf32>
    %cst_7 = arith.constant dense<0.000000e+00> : vector<8xf32>
    %11 = vector.multi_reduction <add>, %10, %cst_7 [1] : vector<8x32xf32> to vector<8xf32>
    %12 = vector.shape_cast %11 : vector<8xf32> to vector<8x1xf32>
    %cst_8 = arith.constant 3.200000e+01 : f32
    %13 = vector.broadcast %cst_8 : f32 to vector<8x1xf32>
    %14 = arith.divf %12, %13 : vector<8x1xf32>
    %15 = vector.broadcast %7 : vector<8x1xf32> to vector<8x32xf32>
    %16 = arith.subf %1, %15 : vector<8x32xf32>
    %cst_9 = arith.constant 9.99999997E-7 : f32
    %17 = vector.broadcast %cst_9 : f32 to vector<8x1xf32>
    %18 = arith.addf %14, %17 : vector<8x1xf32>
    %19 = math.rsqrt %18 : vector<8x1xf32>
    %20 = vector.broadcast %19 : vector<8x1xf32> to vector<8x32xf32>
    %21 = arith.mulf %16, %20 : vector<8x32xf32>
    %22 = vector.broadcast %2 : vector<1x32xf32> to vector<8x32xf32>
    %23 = arith.mulf %21, %22 : vector<8x32xf32>
    %24 = vector.broadcast %3 : vector<1x32xf32> to vector<8x32xf32>
    %25 = arith.addf %23, %24 : vector<8x32xf32>
    %c0_10 = arith.constant 0 : index
    %c0_11 = arith.constant 0 : index
    %c0_12 = arith.constant 0 : index
    %26 = vector.load %arg4[%c0_10, %c0_11, %c0_12] : memref<1x8x32xf32, #tpu.memory_space<vmem>>, vector<1x8x32xf32>
    %27 = vector.shape_cast %26 : vector<1x8x32xf32> to vector<8x32xf32>
    %28 = vector.shape_cast %25 : vector<8x32xf32> to vector<1x8x32xf32>
    tpu.vector_store %arg4[%c0_10, %c0_11, %c0_12], %28 {strides = array<i32>} : memref<1x8x32xf32, #tpu.memory_space<vmem>>, vector<1x8x32xf32>,
    return
  }
  func.func @transform_0(%arg0: i32) -> (i32, i32, i32) {
    %c0_i32 = arith.constant 0 : i32
    %c0_i32_0 = arith.constant 0 : i32
    %c0_i32_1 = arith.constant 0 : i32
    return %arg0, %c0_i32, %c0_i32_0 : i32, i32, i32
  }
  func.func @transform_1(%arg0: i32) -> (i32, i32) {
    %c0_i32 = arith.constant 0 : i32
    %c0_i32_0 = arith.constant 0 : i32
    %c0_i32_1 = arith.constant 0 : i32
    return %c0_i32, %c0_i32_0 : i32, i32
  }
  func.func @transform_2(%arg0: i32) -> (i32, i32) {
    %c0_i32 = arith.constant 0 : i32
    %c0_i32_0 = arith.constant 0 : i32
    %c0_i32_1 = arith.constant 0 : i32
    return %c0_i32, %c0_i32_0 : i32, i32
  }
  func.func @transform_3(%arg0: i32) -> (i32, i32, i32) {
    %c0_i32 = arith.constant 0 : i32
    %c0_i32_0 = arith.constant 0 : i32
    %c0_i32_1 = arith.constant 0 : i32
    return %arg0, %c0_i32, %c0_i32_0 : i32, i32, i32
  }
}

</mosaic_0001>

<bundles_post_ra>
// kernel: encoder_pallas.4
= control target key start
LH: loop header
LB: loop body
LE: loop exit
PB: predicated region body
PF: predicated region fallthrough
CT: control target
= control target key end

     0   :  { %7 = vsyncpa [#allocation3], 0  ;;  %s691_s0 = inlined_call_operand.hbm [shape: f32[2,8,32], index: 0, kind: input, shape index: {}]   ;;  %s692_s1 = inlined_call_operand.hbm [shape: f32[1,8,32], index: 1, kind: input, shape index: {}]   ;;  %s693_s2 = inlined_call_operand.hbm [shape: f32[2,8,32], index: 2, kind: output, shape index: {}]  }
   0x1   :  { %9 = vsyncpa [#allocation3 + $0x1], 0 }
   0x2   :  { %10 = vsyncpa [#allocation6], 0 }
   0x3   :  { %11 = vsyncpa [#allocation4], 0 }
   0x4   :  { %13 = vsyncpa [#allocation4 + $0x1], 0  ;;  %s490_s9 = smov 0   ;;  %s492_s10 = smov 0  }
   0x5   :  { %s494_s11 = smov 0   ;;  %s496_s12 = smov 0  }
   0x6 LB: > { %s511_s13 = sadd.s32 4294967295, %s470_s12   ;;  %s271_s14 = sadd.s32 4294967294, %s470_s12   ;;  %s470_s12 = sphi %s496_s12, %s717_s12   ;;  %s466_s11 = sphi %s494_s11, %s716_s11   ;;  %s462_s10 = sphi %s492_s10, %s715_s10   ;;  %s458_s9 = sphi %s490_s9, %s714_s9  }
   0x7   : > { %p39_p0 = scmp.ne.s32.totalorder %s462_s10, %s458_s9  ;;  %p694_p1 = scmp.eq.s32.totalorder %s511_s13, 0 }
   0x8   : > { %p90_p3 = scmp.eq.s32.totalorder %s271_s14, 1  ;;  %p272_p5 = scmp.ge.s32.totalorder %s470_s12, 1 }
   0x9   : > { %p520_p4 = por %p694_p1, %p39_p0  ;;  %p97_p7 = scmp.lt.s32.totalorder %s470_s12, 3 }
   0xa   : > { %p525_p6 = por %p90_p3, %p39_p0  ;;  %s472_s18 = smov [#allocation5]  }
   0xb   : > { %s697_s15 = scalar_select %p520_p4, 1, 0 }
   0xc   : > { %s698_s16 = scalar_select %p525_p6, 1, 0 }
   0xd   : > { %p530_p8 = pnand %p272_p5, %p97_p7  ;;  %s110_s19 = sshll.u32 %s472_s18, 4  ;;  %s111_s19 = int_to_ptr.vmem [resolvable:$true] %s110_s19 }
   0xe   : > { %s538_s20 = sadd.s32 1, %s470_s12   ;;  %s26_s24 = sadd.s32 1, %s466_s11 }
   0xf   : > { %s699_s17 = scalar_select %p530_p8, 1, 0 }
  0x10   : > { %p293_p10 = pneg %p530_p8  ;;  %s23_s22 = ssub.s32 %s470_s12, %s538_s20 }
  0x11   : > { %p548_p12 = scmp.eq.s32.totalorder %s23_s22, 0  ;;  %s342_s27 = scalar_lea.hbm %s692_s1, 128 }
  0x12   : > { %p542_p11 = pnand %p293_p10, %p694_p1  ;;  %p343_p0 = scmp.ne.s32.totalorder %s692_s1, %s342_s27 }
  0x13   : > { %s701_s23 = scalar_select %p548_p12, 1, 0 }
  0x14   : > { %p344_p3 = pneg %p542_p11  ;;  %p349_p10 = scmp.lt.u32.totalorder %s342_s27, %s692_s1 }
  0x16   : > { %p345_p5 = pnand %p344_p3, %p343_p0 }
  0x18   : > { %p346_p7 = pneg %p345_p5 }
  0x1a   : > { %p351_p9 = pnand %p349_p10, %p346_p7 }
  0x1c   : > { %354 = shalt.err (!%p351_p9)
}
  0x1d   : > { %s355_s4 = scalar_lea.vmem %s111_s19, 128  ;;  %p363_p6 = scmp.lt.s32.totalorder %s111_s19, %s111_s19 }
  0x1e   : > { %p356_p1 = scmp.ne.s32.totalorder %s111_s19, %s355_s4  ;;  %p364_p4 = scmp.lt.s32.totalorder %s355_s4, %s355_s4 }
  0x20   : > { %p358_p2 = pnand %p356_p1, %p344_p3  ;;  %p365_p8 = por %p364_p4, %p363_p6 }
  0x22   : > { %p359_p13 = pneg %p358_p2 }
  0x24   : > { %p366_p12 = pnand %p365_p8, %p359_p13 }
  0x26   : > { %369 = shalt.err (!%p366_p12)
}
  0x27   : > { %296 = dma.hbm_to_vmem [thread:$0]  (!%p542_p11), %s692_s1, 128, %s111_s19, [#allocation6]  }
  0x28   : > { %p702_p1 = scmp.ne.s32.totalorder %s701_s23, 0  ;;  %p34_p2 = scmp.eq.s32.totalorder %s470_s12, 0 }
  0x29   : > { %p703_p4 = scmp.ne.s32.totalorder %s466_s11, %s462_s10  ;;  %p704_p6 = scmp.eq.s32.totalorder %s511_s13, 1 }
  0x2a   : > { %s574_s7 = scalar_select %p702_p1, %s466_s11, %s26_s24  }
  0x2b   : > { %p582_p8 = por %p704_p6, %p703_p4  ;;  %p306_p9 = scmp.lt.s32.totalorder %s470_s12, 2 }
  0x2c   : > { %s121_s14 = sand.u32 1, %s466_s11   ;;  %p706_p12 = pmov %p703_p4 }
  0x2d   : > { %s275_s18 = sshll.u32 %s121_s14, 3  ;;  %s276_s21 = sshll.u32 %s470_s12, 7 }
  0x2e   : > { %p35_p13 = por %p34_p2, %p706_p12  ;;  %s595_s19 = scalar_lea.hbm %s691_s0, %s276_s21 }
  0x2f   : > { %s125_s23 = scalar_lea.vmem [#allocation2], %s275_s18  ;;  %s122_s27 = scalar_lea.sflag [#allocation3], %s121_s14 }
  0x30   : > { %s132_s24 = sshll.u32 %s125_s23, 4  ;;  %p597_p11 = pnand %p306_p9, %p35_p13  ;;  %s601_s24 = int_to_ptr.vmem [resolvable:$true] %s132_s24 }
  0x31   : > { %s370_s28 = scalar_lea.hbm %s595_s19, 128  ;;  %s375_s3 = scalar_lea.hbm %s691_s0, 256 }
  0x32   : > { %p371_p0 = scmp.ne.s32.totalorder %s595_s19, %s370_s28  ;;  %p372_p3 = pneg %p597_p11 }
  0x33   : > { %p376_p10 = scmp.lt.u32.totalorder %s595_s19, %s691_s0  ;;  %p377_p1 = scmp.lt.u32.totalorder %s375_s3, %s370_s28 }
  0x34   : > { %p373_p5 = pnand %p372_p3, %p371_p0  ;;  %p379_p4 = scmp.lt.u32.totalorder %s370_s28, %s595_s19 }
  0x35   : > { %p378_p2 = por %p377_p1, %p376_p10 }
  0x36   : > { %p374_p7 = pneg %p373_p5 }
  0x37   : > { %p380_p6 = por %p379_p4, %p378_p2 }
  0x39   : > { %p381_p9 = pnand %p380_p6, %p374_p7 }
  0x3b   : > { %384 = shalt.err (!%p381_p9)
}
  0x3c   : > { %s385_s6 = scalar_lea.vmem %s601_s24, 128  ;;  %s473_s14 = smov [#allocation2]  }
  0x3d   : > { %p386_p12 = scmp.ne.s32.totalorder %s601_s24, %s385_s6  ;;  %s390_s18 = sshll.u32 %s473_s14, 4  ;;  %s391_s18 = int_to_ptr.vmem [resolvable:$false] %s390_s18 }
  0x3e   : > { %s392_s21 = scalar_lea.vmem %s391_s18, 256  ;;  %p393_p5 = scmp.lt.s32.totalorder %s601_s24, %s391_s18 }
  0x3f   : > { %p388_p13 = pnand %p386_p12, %p372_p3  ;;  %p394_p10 = scmp.lt.s32.totalorder %s392_s21, %s385_s6 }
  0x41   : > { %p389_p0 = pneg %p388_p13  ;;  %p395_p1 = por %p394_p10, %p393_p5 }
  0x43   : > { %p396_p2 = pnand %p395_p1, %p389_p0 }
  0x45   : > { %399 = shalt.err (!%p396_p2)
}
  0x46   : > { %300 = dma.hbm_to_vmem [thread:$0]  (!%p597_p11), %s595_s19, 128, %s601_s24, %s122_s27  }
  0x47   : > { %p708_p7 = scmp.ne.s32.totalorder %s699_s17, 0 }
  0x48   : > { %s631_s22 = sand.u32 (!%p708_p7), 1, %s462_s10   ;;  %p709_p3 = scmp.ne.s32.totalorder (!%p708_p7), %s697_s15, 0 }
  0x49   : > { %141 = sbr.rel (%p708_p7) target bundleno = 109 (0x6d), region = 28  ;;  %s278_s25 = sshll.u32 (!%p708_p7), %s631_s22, 3 }
  0x4a   : > { %s144_s23 = scalar_lea.sflag (!%p708_p7), [#allocation3], %s631_s22  ;;  %s147_s28 = scalar_lea.vmem (!%p708_p7), [#allocation2], %s278_s25 }
  0x50   : > { %445 = dma.done.wait (%p709_p3), %s144_s23, 128  }
  0x51   : > { %447 = vsyncadd (%p709_p3), %s144_s23, 4294967168  ;;  %p710_p4 = scmp.eq.s32.totalorder %s511_s13, 0 }
  0x53   : > { %449 = dma.done.wait (%p710_p4), [#allocation6], 128   ;;  %p711_p11 = pmov %p710_p4 }
  0x54   : > { %s171_s17 = scalar_lea.vmem [#allocation7], %s278_s25  ;;  %s282_s24 = sshll.u32 %s511_s13, 7  ;;  %v172_v0 = vld [vmem:[%s147_s28] sm:$0xff]  ;;  %v173_v1 = vld [vmem:[#allocation5] sm:$0xff]  ;;  %vm175_vm0 = vcmask 261120  }
  0x55   : > { %451 = vsyncadd (%p711_p11), [#allocation6], 4294967168  ;;  %s191_s19 = sshll.u32 %s171_s17, 4  ;;  %v174_v2 = vadd.f32 %v173_v1, %v172_v0  ;;  %s649_s27 = scalar_lea.hbm %s693_s2, %s282_s24  ;;  %s644_s19 = int_to_ptr.vmem [resolvable:$true] %s191_s19 }
  0x56   : > { %s178_s29 = scalar_lea.sflag [#allocation4], %s631_s22  ;;  %s400_s30 = scalar_lea.vmem %s644_s19, 128 }
  0x57   : > { %176 = vst.msk [vmem:[%s171_s17] sm:$0xff] %vm175_vm0, %v174_v2  ;;  %p401_p6 = scmp.ne.s32.totalorder %s644_s19, %s400_s30  ;;  %s474_s13 = smov [#allocation7]  }
  0x58   : > { %s404_s3 = sshll.u32 %s474_s13, 4  ;;  %s405_s3 = int_to_ptr.vmem [resolvable:$false] %s404_s3 }
  0x59   : > { %p402_p9 = pnand %p401_p6, %p582_p8  ;;  %s406_s4 = scalar_lea.vmem %s405_s3, 256 }
  0x5a   : > { %p407_p13 = scmp.lt.s32.totalorder %s644_s19, %s405_s3  ;;  %p408_p0 = scmp.lt.s32.totalorder %s406_s4, %s400_s30 }
  0x5b   : > { %p403_p12 = pneg %p402_p9 }
  0x5c   : > { %p409_p5 = por %p408_p0, %p407_p13 }
  0x5e   : > { %p410_p10 = pnand %p409_p5, %p403_p12 }
  0x60   : > { %413 = shalt.err (!%p410_p10)
}
  0x61   : > { %s414_s5 = scalar_lea.hbm %s649_s27, 128  ;;  %s418_s18 = scalar_lea.hbm %s693_s2, 256 }
  0x62   : > { %p415_p1 = scmp.ne.s32.totalorder %s649_s27, %s414_s5  ;;  %p419_p3 = scmp.lt.u32.totalorder %s649_s27, %s693_s2 }
  0x63   : > { %p420_p4 = scmp.lt.u32.totalorder %s418_s18, %s414_s5  ;;  %p422_p6 = scmp.lt.u32.totalorder %s414_s5, %s649_s27 }
  0x64   : > { %p416_p2 = pnand %p415_p1, %p582_p8 }
  0x65   : > { %p421_p11 = por %p420_p4, %p419_p3 }
  0x66   : > { %p417_p7 = pneg %p416_p2 }
  0x67   : > { %p423_p9 = por %p422_p6, %p421_p11 }
  0x69   : > { %p424_p12 = pnand %p423_p9, %p417_p7 }
  0x6b   : > { %427 = shalt.err (!%p424_p12)
}
  0x6c   : > { %291 = dma.vmem_to_hbm [thread:$0]  (%p582_p8), %s644_s19, 128, %s649_s27, %s178_s29  }
  0x6d PF: > { %s203_s25 = sand.u32 1, %s458_s9   ;;  %p712_p13 = scmp.ne.s32.totalorder %s698_s16, 0 }
  0x6e   : > { %p713_p0 = scmp.ge.s32.totalorder %s470_s12, 2  ;;  %s204_s23 = scalar_lea.sflag [#allocation4], %s203_s25 }
  0x70   : > { %p302_p5 = pnand %p713_p0, %p712_p13 }
  0x72   : > { %453 = dma.done.wait (!%p302_p5), %s204_s23, 128  }
  0x73   : > { %455 = vsyncadd (!%p302_p5), %s204_s23, 4294967168  ;;  %p16_p10 = scmp.ge.s32.totalorder %s538_s20, 4   ;;  %s714_s9 = smov %s462_s10 }
  0x74   : > { %s715_s10 = smov %s466_s11  ;;  %s716_s11 = smov %s574_s7 }
  0x75   : > { %s717_s12 = smov %s538_s20  ;;  %18 = sbr.rel (!%p16_p10) target bundleno = 6 (0x6), region = 77 }
  0x7c   :  { %209 = vsyncpa [#allocation3], 1 }
  0x7d   :  { %211 = vsyncpa [#allocation3 + $0x1], 1 }
  0x7e   :  { %212 = vsyncpa [#allocation6], 1 }
  0x7f   :  { %213 = vsyncpa [#allocation4], 1 }
  0x80   :  { %215 = vsyncpa [#allocation4 + $0x1], 1 }

// kernel: encoder_pallas.7
= control target key start
LH: loop header
LB: loop body
LE: loop exit
PB: predicated region body
PF: predicated region fallthrough
CT: control target
= control target key end

     0   :  { %8 = vsyncpa [#allocation3], 0  ;;  %s845_s0 = inlined_call_operand.hbm [shape: f32[2,8,32], index: 0, kind: input, shape index: {}]   ;;  %s846_s1 = inlined_call_operand.hbm [shape: f32[1,32], index: 1, kind: input, shape index: {}]   ;;  %s847_s2 = inlined_call_operand.hbm [shape: f32[1,32], index: 2, kind: input, shape index: {}]   ;;  %s848_s3 = inlined_call_operand.hbm [shape: f32[2,8,32], index: 3, kind: output, shape index: {}]  }
   0x1   :  { %10 = vsyncpa [#allocation3 + $0x1], 0 }
   0x2   :  { %11 = vsyncpa [#allocation6], 0 }
   0x3   :  { %12 = vsyncpa [#allocation4], 0 }
   0x4   :  { %14 = vsyncpa [#allocation4 + $0x1], 0  ;;  %s616_s12 = smov 0   ;;  %s618_s13 = smov 0  }
   0x5   :  { %s620_s14 = smov 0   ;;  %s622_s15 = smov 0  }
   0x6 LB: > { %s637_s16 = sadd.s32 4294967295, %s590_s15   ;;  %s347_s17 = sadd.s32 4294967294, %s590_s15   ;;  %s590_s15 = sphi %s622_s15, %s868_s15   ;;  %s586_s14 = sphi %s620_s14, %s867_s14   ;;  %s582_s13 = sphi %s618_s13, %s866_s13   ;;  %s578_s12 = sphi %s616_s12, %s865_s12  }
   0x7   : > { %p40_p0 = scmp.ne.s32.totalorder %s582_s13, %s578_s12  ;;  %p849_p1 = scmp.eq.s32.totalorder %s637_s16, 0 }
   0x8   : > { %p112_p3 = scmp.eq.s32.totalorder %s347_s17, 1  ;;  %p348_p5 = scmp.ge.s32.totalorder %s590_s15, 1 }
   0x9   : > { %p646_p4 = por %p849_p1, %p40_p0  ;;  %p119_p7 = scmp.lt.s32.totalorder %s590_s15, 3 }
   0xa   : > { %p651_p6 = por %p112_p3, %p40_p0  ;;  %s592_s21 = smov [#allocation5]  }
   0xb   : > { %s852_s18 = scalar_select %p646_p4, 1, 0 }
   0xc   : > { %s853_s19 = scalar_select %p651_p6, 1, 0 }
   0xd   : > { %p656_p8 = pnand %p348_p5, %p119_p7  ;;  %s132_s22 = sshll.u32 %s592_s21, 4  ;;  %s133_s22 = int_to_ptr.vmem [resolvable:$true] %s132_s22 }
   0xe   : > { %s593_s23 = smov [#allocation7]   ;;  %s672_s26 = sadd.s32 1, %s590_s15  }
   0xf   : > { %s854_s20 = scalar_select %p656_p8, 1, 0 }
  0x10   : > { %p377_p10 = pneg %p656_p8  ;;  %s143_s24 = sshll.u32 %s593_s23, 4  ;;  %s669_s24 = int_to_ptr.vmem [resolvable:$true] %s143_s24 }
  0x11   : > { %s24_s27 = ssub.s32 %s590_s15, %s672_s26  ;;  %s434_s30 = scalar_lea.hbm %s846_s1, 16 }
  0x12   : > { %p665_p11 = pnand %p377_p10, %p849_p1  ;;  %p435_p12 = scmp.ne.s32.totalorder %s846_s1, %s434_s30 }
  0x13   : > { %p441_p5 = scmp.lt.u32.totalorder %s434_s30, %s846_s1 }
  0x14   : > { %p436_p13 = pneg %p665_p11 }
  0x16   : > { %p437_p0 = pnand %p436_p13, %p435_p12 }
  0x18   : > { %p438_p3 = pneg %p437_p0 }
  0x1a   : > { %p443_p7 = pnand %p441_p5, %p438_p3 }
  0x1c   : > { %446 = shalt.err (!%p443_p7)
}
  0x1d   : > { %s447_s8 = scalar_lea.vmem %s133_s22, 16  ;;  %s454_s9 = scalar_lea.vmem %s133_s22, 32 }
  0x1e   : > { %p448_p10 = scmp.ne.s32.totalorder %s133_s22, %s447_s8  ;;  %p455_p2 = scmp.lt.s32.totalorder %s133_s22, %s133_s22 }
  0x1f   : > { %p456_p6 = scmp.lt.s32.totalorder %s454_s9, %s447_s8 }
  0x20   : > { %p450_p9 = pnand %p448_p10, %p436_p13 }
  0x21   : > { %p457_p4 = por %p456_p6, %p455_p2 }
  0x22   : > { %p451_p1 = pneg %p450_p9 }
  0x24   : > { %p458_p8 = pnand %p457_p4, %p451_p1 }
  0x26   : > { %461 = shalt.err (!%p458_p8)
}
  0x27   : > { %380 = dma.hbm_to_vmem [thread:$0]  (!%p665_p11), %s846_s1, 16, %s133_s22, [#allocation6]  }
  0x28   : > { %s462_s23 = scalar_lea.hbm %s847_s2, 16 }
  0x29   : > { %p463_p9 = scmp.ne.s32.totalorder %s847_s2, %s462_s23  ;;  %p469_p4 = scmp.lt.u32.totalorder %s462_s23, %s847_s2 }
  0x2b   : > { %p465_p2 = pnand %p463_p9, %p436_p13 }
  0x2d   : > { %p466_p1 = pneg %p465_p2 }
  0x2f   : > { %p471_p6 = pnand %p469_p4, %p466_p1 }
  0x31   : > { %474 = shalt.err (!%p471_p6)
}
  0x32   : > { %s475_s22 = scalar_lea.vmem %s669_s24, 16  ;;  %s482_s5 = scalar_lea.vmem %s669_s24, 32 }
  0x33   : > { %p476_p8 = scmp.ne.s32.totalorder %s669_s24, %s475_s22  ;;  %p483_p3 = scmp.lt.s32.totalorder %s669_s24, %s669_s24 }
  0x34   : > { %p484_p5 = scmp.lt.s32.totalorder %s482_s5, %s475_s22 }
  0x35   : > { %p478_p12 = pnand %p476_p8, %p436_p13 }
  0x36   : > { %p485_p7 = por %p484_p5, %p483_p3 }
  0x37   : > { %p479_p0 = pneg %p478_p12 }
  0x39   : > { %p486_p10 = pnand %p485_p7, %p479_p0 }
  0x3b   : > { %489 = shalt.err (!%p486_p10)
}
  0x3c   : > { %383 = dma.hbm_to_vmem [thread:$0]  (!%p665_p11), %s847_s2, 16, %s669_s24, [#allocation6]  }
  0x3d   : > { %p25_p13 = scmp.eq.s32.totalorder %s24_s27, 0  ;;  %s27_s8 = sadd.s32 1, %s586_s14 }
  0x3e   : > { %p34_p9 = scmp.ne.s32.totalorder %s586_s14, %s582_s13  ;;  %p35_p2 = scmp.eq.s32.totalorder %s590_s15, 0 }
  0x3f   : > { %s732_s25 = scalar_select %p25_p13, %s586_s14, %s27_s8  }
  0x40   : > { %p36_p1 = por %p35_p2, %p34_p9  ;;  %p856_p4 = scmp.eq.s32.totalorder %s637_s16, 1 }
  0x41   : > { %p394_p8 = scmp.lt.s32.totalorder %s590_s15, 2  ;;  %s154_s10 = sand.u32 1, %s586_s14  }
  0x42   : > { %p736_p6 = por %p856_p4, %p34_p9  ;;  %s352_s11 = sshll.u32 %s154_s10, 3 }
  0x43   : > { %s353_s17 = sshll.u32 %s590_s15, 7  ;;  %s158_s27 = scalar_lea.vmem [#allocation2], %s352_s11 }
  0x44   : > { %s746_s24 = scalar_lea.hbm %s845_s0, %s353_s17  ;;  %s165_s28 = sshll.u32 %s158_s27, 4  ;;  %s748_s28 = int_to_ptr.vmem [resolvable:$true] %s165_s28 }
  0x45   : > { %p750_p11 = pnand %p394_p8, %p36_p1  ;;  %s155_s30 = scalar_lea.sflag [#allocation3], %s154_s10 }
  0x46   : > { %s490_s4 = scalar_lea.hbm %s746_s24, 128  ;;  %s495_s6 = scalar_lea.hbm %s845_s0, 256 }
  0x47   : > { %p491_p12 = scmp.ne.s32.totalorder %s746_s24, %s490_s4  ;;  %p492_p0 = pneg %p750_p11 }
  0x48   : > { %p496_p7 = scmp.lt.u32.totalorder %s746_s24, %s845_s0  ;;  %p497_p10 = scmp.lt.u32.totalorder %s495_s6, %s490_s4 }
  0x49   : > { %p493_p3 = pnand %p492_p0, %p491_p12  ;;  %p499_p9 = scmp.lt.u32.totalorder %s490_s4, %s746_s24 }
  0x4a   : > { %p498_p13 = por %p497_p10, %p496_p7 }
  0x4b   : > { %p494_p5 = pneg %p493_p3 }
  0x4c   : > { %p500_p2 = por %p499_p9, %p498_p13 }
  0x4e   : > { %p501_p1 = pnand %p500_p2, %p494_p5 }
  0x50   : > { %504 = shalt.err (!%p501_p1)
}
  0x51   : > { %s505_s10 = scalar_lea.vmem %s748_s28, 128  ;;  %s594_s11 = smov [#allocation2]  }
  0x52   : > { %p506_p4 = scmp.ne.s32.totalorder %s748_s28, %s505_s10  ;;  %s510_s17 = sshll.u32 %s594_s11, 4  ;;  %s511_s17 = int_to_ptr.vmem [resolvable:$false] %s510_s17 }
  0x53   : > { %s512_s21 = scalar_lea.vmem %s511_s17, 256  ;;  %p513_p3 = scmp.lt.s32.totalorder %s748_s28, %s511_s17 }
  0x54   : > { %p508_p8 = pnand %p506_p4, %p492_p0  ;;  %p514_p7 = scmp.lt.s32.totalorder %s512_s21, %s505_s10 }
  0x56   : > { %p509_p12 = pneg %p508_p8  ;;  %p515_p10 = por %p514_p7, %p513_p3 }
  0x58   : > { %p516_p13 = pnand %p515_p10, %p509_p12 }
  0x5a   : > { %519 = shalt.err (!%p516_p13)
}
  0x5b   : > { %387 = dma.hbm_to_vmem [thread:$0]  (!%p750_p11), %s746_s24, 128, %s748_s28, %s155_s30  }
  0x5c   : > { %p859_p5 = scmp.ne.s32.totalorder %s854_s20, 0 }
  0x5d   : > { %s782_s23 = sand.u32 (!%p859_p5), 1, %s582_s13   ;;  %p860_p0 = scmp.ne.s32.totalorder (!%p859_p5), %s852_s18, 0 }
  0x5e   : > { %174 = sbr.rel (%p859_p5) target bundleno = 433 (0x1b1), region = 32  ;;  %s355_s27 = sshll.u32 (!%p859_p5), %s782_s23, 3 }
  0x5f   : > { %s177_s4 = scalar_lea.sflag (!%p859_p5), [#allocation3], %s782_s23  ;;  %s180_s22 = scalar_lea.vmem (!%p859_p5), [#allocation2], %s355_s27 }
  0x65   : > { %565 = dma.done.wait (%p860_p0), %s177_s4, 128  }
  0x66   : > { %567 = vsyncadd (%p860_p0), %s177_s4, 4294967168  ;;  %p861_p9 = scmp.eq.s32.totalorder %s637_s16, 0 }
  0x68   : > { %569 = dma.done.wait (%p861_p9), [#allocation6], 32   ;;  %p862_p11 = pmov %p861_p9 }
  0x69   : > { %vm214_vm0 = vcmask 261120   ;;  %v211_v0 = vld [vmem:[%s180_s22] sm:$0xff]  ;;  %v359_v11 = vld [vmem:[#allocation5] ss:$0 sm:$0xff]  ;;  %v360_v13 = vld [vmem:[#allocation7] ss:$0 sm:$0xff] }
  0x6a   : > { %571 = vsyncadd (%p862_p11), [#allocation6], 4294967264  ;;  %v215_v1 = vsel %vm214_vm0, %v211_v0, 0.0  ;;  %s362_s18 = sshll.u32 %s637_s16, 7  ;;  %s210_s20 = scalar_lea.vmem [#allocation8], %s355_s27 }
  0x6b   : > { %216 = vadd.xlane.f32.xlu0 %v215_v1  ;;  %s258_s24 = sshll.u32 %s210_s20, 4  ;;  %s800_s30 = scalar_lea.hbm %s848_s3, %s362_s18  ;;  %s802_s24 = int_to_ptr.vmem [resolvable:$true] %s258_s24 }
  0x6c   : > { %s245_s5 = scalar_lea.sflag [#allocation4], %s782_s23  ;;  %s520_s6 = scalar_lea.vmem %s802_s24, 128 }
  0x6d   : > { %p521_p2 = scmp.ne.s32.totalorder %s802_s24, %s520_s6  ;;  %s595_s16 = smov [#allocation8]  }
  0x6e   : > { %s524_s7 = sshll.u32 %s595_s16, 4  ;;  %s525_s7 = int_to_ptr.vmem [resolvable:$false] %s524_s7 }
  0x6f   : > { %p522_p1 = pnand %p521_p2, %p736_p6  ;;  %s526_s8 = scalar_lea.vmem %s525_s7, 256 }
  0x70   : > { %p527_p8 = scmp.lt.s32.totalorder %s802_s24, %s525_s7  ;;  %p528_p12 = scmp.lt.s32.totalorder %s526_s8, %s520_s6 }
  0x71   : > { %p523_p4 = pneg %p522_p1 }
  0x72   : > { %p529_p3 = por %p528_p12, %p527_p8 }
  0x74   : > { %p530_p7 = pnand %p529_p3, %p523_p4 }
  0xf8   : > { %v217_v2 = vpop.xlane.xlu0 %216 }
  0xf9   : > { %v219_v3 = vmul.f32 0.03125, %v217_v2 }
  0xfb   : > { %v220_v4 = vsub.f32 %v211_v0, %v219_v3 }
  0xfd   : > { %v221_v5 = vmul.f32 %v220_v4, %v220_v4 }
  0xff   : > { %v222_v6 = vsel %vm214_vm0, %v221_v5, 0.0 }
 0x100   : > { %223 = vadd.xlane.f32.xlu0 %v222_v6 }
 0x18d   : > { %v224_v7 = vpop.xlane.xlu0 %223 }
 0x18e   : > { %v225_v8 = vmul.f32 0.03125, %v224_v7 }
 0x190   : > { %v226_v9 = vadd.f32 1e-06, %v225_v8 }
 0x192   : > { %432 = vrsqrt.f32 %v226_v9 }
 0x19c   : > { %v433_v10 = vpop.eup %432 }
 0x19d   : > { %v228_v12 = vmul.f32 %v433_v10, %v220_v4 }
 0x19f   : > { %v235_v14 = vmul.f32 %v359_v11, %v228_v12 }
 0x1a1   : > { %v242_v15 = vadd.f32 %v360_v13, %v235_v14 }
 0x1a3   : > { %243 = vst.msk [vmem:[%s210_s20] sm:$0xff] %vm214_vm0, %v242_v15 }
 0x1a4   : > { %533 = shalt.err (!%p530_p7)
}
 0x1a5   : > { %s534_s10 = scalar_lea.hbm %s800_s30, 128  ;;  %s538_s21 = scalar_lea.hbm %s848_s3, 256 }
 0x1a6   : > { %p535_p10 = scmp.ne.s32.totalorder %s800_s30, %s534_s10  ;;  %p539_p0 = scmp.lt.u32.totalorder %s800_s30, %s848_s3 }
 0x1a7   : > { %p540_p9 = scmp.lt.u32.totalorder %s538_s21, %s534_s10  ;;  %p542_p2 = scmp.lt.u32.totalorder %s534_s10, %s800_s30 }
 0x1a8   : > { %p536_p13 = pnand %p535_p10, %p736_p6 }
 0x1a9   : > { %p541_p11 = por %p540_p9, %p539_p0 }
 0x1aa   : > { %p537_p5 = pneg %p536_p13 }
 0x1ab   : > { %p543_p1 = por %p542_p2, %p541_p11 }
 0x1ad   : > { %p544_p4 = pnand %p543_p1, %p537_p5 }
 0x1af   : > { %547 = shalt.err (!%p544_p4)
}
 0x1b0   : > { %375 = dma.vmem_to_hbm [thread:$0]  (%p736_p6), %s802_s24, 128, %s800_s30, %s245_s5  }
 0x1b1 PF: > { %s270_s4 = sand.u32 1, %s578_s12   ;;  %p863_p8 = scmp.ne.s32.totalorder %s853_s19, 0 }
 0x1b2   : > { %p864_p12 = scmp.ge.s32.totalorder %s590_s15, 2  ;;  %s271_s22 = scalar_lea.sflag [#allocation4], %s270_s4 }
 0x1b4   : > { %p389_p3 = pnand %p864_p12, %p863_p8 }
 0x1b6   : > { %573 = dma.done.wait (!%p389_p3), %s271_s22, 128  }
 0x1b7   : > { %575 = vsyncadd (!%p389_p3), %s271_s22, 4294967168  ;;  %p17_p7 = scmp.ge.s32.totalorder %s672_s26, 4   ;;  %s865_s12 = smov %s582_s13 }
 0x1b8   : > { %s866_s13 = smov %s586_s14  ;;  %s867_s14 = smov %s732_s25 }
 0x1b9   : > { %s868_s15 = smov %s672_s26  ;;  %19 = sbr.rel (!%p17_p7) target bundleno = 6 (0x6), region = 85 }
 0x1c0   :  { %276 = vsyncpa [#allocation3], 1 }
 0x1c1   :  { %278 = vsyncpa [#allocation3 + $0x1], 1 }
 0x1c2   :  { %279 = vsyncpa [#allocation6], 1 }
 0x1c3   :  { %280 = vsyncpa [#allocation4], 1 }
 0x1c4   :  { %282 = vsyncpa [#allocation4 + $0x1], 1 }

// kernel: encoder_pallas.5
= control target key start
LH: loop header
LB: loop body
LE: loop exit
PB: predicated region body
PF: predicated region fallthrough
CT: control target
= control target key end

     0   :  { %s4712_s0 = inlined_call_operand.hbm [shape: f32[2,8,32], index: 0, kind: input, shape index: {}]   ;;  %s4713_s1 = inlined_call_operand.hbm [shape: f32[1,32], index: 1, kind: input, shape index: {}]   ;;  %s4714_s2 = inlined_call_operand.hbm [shape: f32[1,32], index: 2, kind: input, shape index: {}]   ;;  %s4715_s3 = inlined_call_operand.hbm [shape: bf16[4,32,8], index: 3, kind: input, shape index: {}]   ;;  %s4716_s4 = inlined_call_operand.hbm [shape: f32[4,1,8], index: 4, kind: input, shape index: {}]   ;;  %s4717_s5 = inlined_call_operand.hbm [shape: bf16[4,32,8], index: 5, kind: input, shape index: {}]   ;;  %s4718_s6 = inlined_call_operand.hbm [shape: f32[4,1,8], index: 6, kind: input, shape index: {}]   ;;  %s4719_s7 = inlined_call_operand.hbm [shape: bf16[4,32,8], index: 7, kind: input, shape index: {}]   ;;  %s4720_s8 = inlined_call_operand.hbm [shape: f32[4,1,8], index: 8, kind: input, shape index: {}]   ;;  %s4721_s9 = inlined_call_operand.hbm [shape: bf16[4,8,32], index: 9, kind: input, shape index: {}]   ;;  %s4722_s10 = inlined_call_operand.hbm [shape: f32[1,32], index: 10, kind: input, shape index: {}]   ;;  %s4723_s11 = inlined_call_operand.hbm [shape: f32[1,32], index: 11, kind: input, shape index: {}]   ;;  %s4724_s12 = inlined_call_operand.hbm [shape: f32[1,32], index: 12, kind: input, shape index: {}]   ;;  %s4725_s13 = inlined_call_operand.hbm [shape: bf16[32,64], index: 13, kind: input, shape index: {}]   ;;  %s4726_s14 = inlined_call_operand.hbm [shape: f32[1,64], index: 14, kind: input, shape index: {}]   ;;  %s4727_s15 = inlined_call_operand.hbm [shape: bf16[64,32], index: 15, kind: input, shape index: {}]   ;;  %s4728_s16 = inlined_call_operand.hbm [shape: f32[1,32], index: 16, kind: input, shape index: {}]   ;;  %s4729_s17 = inlined_call_operand.hbm [shape: f32[2,8,32], index: 17, kind: output, shape index: {}]  }
   0x1   :  { %4745 = sst [smem:[#allocation46_spill]] %s4712_s0 }
   0x2   :  { %4746 = sst [smem:[#allocation47_spill]] %s4713_s1 }
   0x3   :  { %4747 = sst [smem:[#allocation48_spill]] %s4714_s2 }
   0x4   :  { %4748 = sst [smem:[#allocation49_spill]] %s4715_s3 }
   0x5   :  { %4749 = sst [smem:[#allocation50_spill]] %s4729_s17 }
   0x6   :  { %22 = vsyncpa [#allocation3], 0 }
   0x7   :  { %24 = vsyncpa [#allocation3 + $0x1], 0 }
   0x8   :  { %25 = vsyncpa [#allocation6], 0 }
   0x9   :  { %26 = vsyncpa [#allocation9], 0 }
   0xa   :  { %27 = vsyncpa [#allocation12], 0 }
   0xb   :  { %28 = vsyncpa [#allocation15], 0 }
   0xc   :  { %29 = vsyncpa [#allocation18], 0 }
   0xd   :  { %30 = vsyncpa [#allocation21], 0 }
   0xe   :  { %31 = vsyncpa [#allocation24], 0 }
   0xf   :  { %32 = vsyncpa [#allocation27], 0 }
  0x10   :  { %33 = vsyncpa [#allocation4], 0 }
  0x11   :  { %35 = vsyncpa [#allocation4 + $0x1], 0  ;;  %s3968_s24 = smov 0   ;;  %s3970_s25 = smov 0  }
  0x12   :  { %s3972_s26 = smov 0   ;;  %s3974_s27 = smov 0  }
  0x13 LB: > { %4750 = sst [smem:[#allocation40_spill]] %s3840_s24  ;;  %s3854_s28 = smov [#allocation5]   ;;  %s3852_s27 = sphi %s3974_s27, %s4805_s27   ;;  %s3848_s26 = sphi %s3972_s26, %s4804_s26   ;;  %s3844_s25 = sphi %s3970_s25, %s4803_s25   ;;  %s3840_s24 = sphi %s3968_s24, %s4800_s24  }
  0x14   : > { %4751 = sst [smem:[#allocation41_spill]] %s3844_s25  ;;  %s447_s29 = sshll.u32 %s3854_s28, 4  ;;  %s3994_s29 = int_to_ptr.vmem [resolvable:$true] %s447_s29 }
  0x15   : > { %4752 = sst [smem:[#allocation42_spill]] %s3848_s26  ;;  %s3989_s0 = sadd.s32 4294967295, %s3852_s27  }
  0x16   : > { %4753 = sst [smem:[#allocation43_spill]] %s3852_s27  ;;  %p2637_p0 = scmp.ge.s32.totalorder %s3852_s27, 1 }
  0x17   : > { %4754 = sst [smem:[#allocation44_spill]] %s3989_s0  ;;  %p4742_p1 = scmp.eq.s32.totalorder %s3989_s0, 0 }
  0x18   : > { %p434_p2 = scmp.lt.s32.totalorder %s3852_s27, 3  ;;  %s3855_s18 = smov [#allocation8]  }
  0x19   : > { %s468_s19 = sshll.u32 %s3855_s18, 4  ;;  %s3856_s20 = smov [#allocation11]   ;;  %s4003_s19 = int_to_ptr.vmem [resolvable:$true] %s468_s19 }
  0x1a   : > { %p3996_p3 = pnand %p2637_p0, %p434_p2  ;;  %s494_s21 = sshll.u32 %s3856_s20, 4  ;;  %s4011_s21 = int_to_ptr.vmem [resolvable:$true] %s494_s21 }
  0x1b   : > { %s4758_s28 = sld [smem:[#allocation47_spill]] }
  0x1c   : > { %s4755_s30 = scalar_select %p3996_p3, 1, 0 }
  0x1d   : > { %p3079_p5 = pneg %p3996_p3 }
  0x1e   : > { %4756 = sst [smem:[#allocation45_spill]] %s4755_s30 }
  0x1f   : > { %p4007_p6 = pnand %p3079_p5, %p4742_p1 }
  0x21   : > { %s3276_s17 = scalar_lea.hbm %s4758_s28, 16  ;;  %p4021_p8 = pneg %p4007_p6 }
  0x22   : > { %p3277_p7 = scmp.ne.s32.totalorder %s4758_s28, %s3276_s17  ;;  %p3283_p11 = scmp.lt.u32.totalorder %s3276_s17, %s4758_s28 }
  0x24   : > { %p3279_p9 = pnand %p4021_p8, %p3277_p7 }
  0x26   : > { %p3280_p10 = pneg %p3279_p9 }
  0x28   : > { %p3285_p12 = pnand %p3283_p11, %p3280_p10 }
  0x2a   : > { %3288 = shalt.err (!%p3285_p12)
}
  0x2b   : > { %s3289_s24 = scalar_lea.vmem %s3994_s29, 16  ;;  %s3296_s30 = scalar_lea.vmem %s3994_s29, 32 }
  0x2c   : > { %p3290_p13 = scmp.ne.s32.totalorder %s3994_s29, %s3289_s24  ;;  %p3297_p5 = scmp.lt.s32.totalorder %s3994_s29, %s3994_s29 }
  0x2d   : > { %p3298_p7 = scmp.lt.s32.totalorder %s3296_s30, %s3289_s24 }
  0x2e   : > { %p3292_p0 = pnand %p3290_p13, %p4021_p8 }
  0x2f   : > { %p3299_p9 = por %p3298_p7, %p3297_p5 }
  0x30   : > { %p3293_p2 = pneg %p3292_p0 }
  0x32   : > { %p3300_p4 = pnand %p3299_p9, %p3293_p2 }
  0x34   : > { %3303 = shalt.err (!%p3300_p4)
}
  0x35   : > { %3082 = dma.hbm_to_vmem [thread:$0]  (!%p4007_p6), %s4758_s28, 16, %s3994_s29, [#allocation6]  }
  0x36   : > { %s4760_s3 = sld [smem:[#allocation49_spill]] }
  0x3c   : > { %s3304_s20 = scalar_lea.hbm %s4760_s3, 1024 }
  0x3d   : > { %p3305_p10 = scmp.ne.s32.totalorder %s4760_s3, %s3304_s20  ;;  %p3311_p4 = scmp.lt.u32.totalorder %s3304_s20, %s4760_s3 }
  0x3f   : > { %p3307_p11 = pnand %p3305_p10, %p4021_p8 }
  0x41   : > { %p3308_p12 = pneg %p3307_p11 }
  0x43   : > { %p3313_p13 = pnand %p3311_p4, %p3308_p12 }
  0x45   : > { %3316 = shalt.err (!%p3313_p13)
}
  0x46   : > { %s3317_s29 = scalar_lea.vmem %s4003_s19, 1024  ;;  %p3325_p7 = scmp.lt.s32.totalorder %s4003_s19, %s4003_s19 }
  0x47   : > { %p3318_p0 = scmp.ne.s32.totalorder %s4003_s19, %s3317_s29  ;;  %p3326_p9 = scmp.lt.s32.totalorder %s3317_s29, %s3317_s29 }
  0x49   : > { %p3320_p2 = pnand %p3318_p0, %p4021_p8  ;;  %p3327_p10 = por %p3326_p9, %p3325_p7 }
  0x4b   : > { %p3321_p5 = pneg %p3320_p2 }
  0x4d   : > { %p3328_p11 = pnand %p3327_p10, %p3321_p5 }
  0x4f   : > { %3331 = shalt.err (!%p3328_p11)
}
  0x50   : > { %s3857_s25 = smov 64   ;;  %s3858_s26 = smov 4  }
  0x51   : > { %3088 = dma.hbm_to_vmem [thread:$0]  (!%p4007_p6), %s4760_s3, 1024, %s4003_s19, [#allocation9], %s3857_s25, %s3857_s25, %s3858_s26  }
  0x52   : > { %s3332_s20 = scalar_lea.hbm %s4717_s5, 1024 }
  0x53   : > { %p3333_p12 = scmp.ne.s32.totalorder %s4717_s5, %s3332_s20  ;;  %p3339_p0 = scmp.lt.u32.totalorder %s3332_s20, %s4717_s5 }
  0x55   : > { %p3335_p4 = pnand %p3333_p12, %p4021_p8 }
  0x57   : > { %p3336_p13 = pneg %p3335_p4 }
  0x59   : > { %p3341_p2 = pnand %p3339_p0, %p3336_p13 }
  0x5b   : > { %3344 = shalt.err (!%p3341_p2)
}
  0x5c   : > { %s3345_s19 = scalar_lea.vmem %s4011_s21, 1024  ;;  %p3353_p10 = scmp.lt.s32.totalorder %s4011_s21, %s4011_s21 }
  0x5d   : > { %p3346_p5 = scmp.ne.s32.totalorder %s4011_s21, %s3345_s19  ;;  %p3354_p11 = scmp.lt.s32.totalorder %s3345_s19, %s3345_s19 }
  0x5f   : > { %p3348_p7 = pnand %p3346_p5, %p4021_p8  ;;  %p3355_p12 = por %p3354_p11, %p3353_p10 }
  0x61   : > { %p3349_p9 = pneg %p3348_p7 }
  0x63   : > { %p3356_p4 = pnand %p3355_p12, %p3349_p9 }
  0x65   : > { %3359 = shalt.err (!%p3356_p4)
}
  0x66   : > { %3094 = dma.hbm_to_vmem [thread:$0]  (!%p4007_p6), %s4717_s5, 1024, %s4011_s21, [#allocation12], %s3857_s25, %s3857_s25, %s3858_s26  }
  0x67   : > { %s3859_s0 = smov [#allocation14]   ;;  %s3860_s23 = smov [#allocation17]  }
  0x68   : > { %s520_s22 = sshll.u32 %s3859_s0, 4  ;;  %s546_s20 = sshll.u32 %s3860_s23, 4  ;;  %s521_s22 = int_to_ptr.vmem [resolvable:$true] %s520_s22  ;;  %s547_s20 = int_to_ptr.vmem [resolvable:$true] %s546_s20 }
  0x69   : > { %s3360_s29 = scalar_lea.hbm %s4719_s7, 1024 }
  0x6a   : > { %p3361_p13 = scmp.ne.s32.totalorder %s4719_s7, %s3360_s29  ;;  %p3367_p5 = scmp.lt.u32.totalorder %s3360_s29, %s4719_s7 }
  0x6c   : > { %p3363_p0 = pnand %p3361_p13, %p4021_p8 }
  0x6e   : > { %p3364_p2 = pneg %p3363_p0 }
  0x70   : > { %p3369_p7 = pnand %p3367_p5, %p3364_p2 }
  0x72   : > { %3372 = shalt.err (!%p3369_p7)
}
  0x73   : > { %s3373_s21 = scalar_lea.vmem %s521_s22, 1024  ;;  %p3381_p12 = scmp.lt.s32.totalorder %s521_s22, %s521_s22 }
  0x74   : > { %p3374_p9 = scmp.ne.s32.totalorder %s521_s22, %s3373_s21  ;;  %p3382_p4 = scmp.lt.s32.totalorder %s3373_s21, %s3373_s21 }
  0x76   : > { %p3376_p10 = pnand %p3374_p9, %p4021_p8  ;;  %p3383_p1 = por %p3382_p4, %p3381_p12 }
  0x78   : > { %p3377_p11 = pneg %p3376_p10 }
  0x7a   : > { %p3384_p3 = pnand %p3383_p1, %p3377_p11 }
  0x7c   : > { %3387 = shalt.err (!%p3384_p3)
}
  0x7d   : > { %3100 = dma.hbm_to_vmem [thread:$0]  (!%p4007_p6), %s4719_s7, 1024, %s521_s22, [#allocation15], %s3857_s25, %s3857_s25, %s3858_s26  }
  0x7e   : > { %s3388_s23 = scalar_lea.hbm %s4721_s9, 256 }
  0x7f   : > { %p3389_p1 = scmp.ne.s32.totalorder %s4721_s9, %s3388_s23  ;;  %p3395_p0 = scmp.lt.u32.totalorder %s3388_s23, %s4721_s9 }
  0x81   : > { %p3391_p3 = pnand %p3389_p1, %p4021_p8 }
  0x83   : > { %p3392_p13 = pneg %p3391_p3 }
  0x85   : > { %p3397_p2 = pnand %p3395_p0, %p3392_p13 }
  0x87   : > { %3400 = shalt.err (!%p3397_p2)
}
  0x88   : > { %s3401_s28 = scalar_lea.vmem %s547_s20, 256  ;;  %p3409_p10 = scmp.lt.s32.totalorder %s547_s20, %s547_s20 }
  0x89   : > { %p3402_p5 = scmp.ne.s32.totalorder %s547_s20, %s3401_s28  ;;  %p3410_p11 = scmp.lt.s32.totalorder %s3401_s28, %s3401_s28 }
  0x8b   : > { %p3404_p7 = pnand %p3402_p5, %p4021_p8  ;;  %p3411_p12 = por %p3410_p11, %p3409_p10 }
  0x8d   : > { %p3405_p9 = pneg %p3404_p7 }
  0x8f   : > { %p3412_p4 = pnand %p3411_p12, %p3405_p9 }
  0x91   : > { %3415 = shalt.err (!%p3412_p4)
}
  0x92   : > { %3106 = dma.hbm_to_vmem [thread:$0]  (!%p4007_p6), %s4721_s9, 256, %s547_s20, [#allocation18], %s3857_s25, %s3857_s25, %s3858_s26  }
  0x93   : > { %s3861_s3 = smov [#allocation20]   ;;  %s3862_s17 = smov [#allocation23]  }
  0x94   : > { %s571_s27 = sshll.u32 %s3861_s3, 4  ;;  %s592_s0 = sshll.u32 %s3862_s17, 4  ;;  %s572_s27 = int_to_ptr.vmem [resolvable:$true] %s571_s27  ;;  %s593_s0 = int_to_ptr.vmem [resolvable:$true] %s592_s0 }
  0x95   : > { %s3416_s30 = scalar_lea.hbm %s4723_s11, 16 }
  0x96   : > { %p3417_p1 = scmp.ne.s32.totalorder %s4723_s11, %s3416_s30  ;;  %p3423_p0 = scmp.lt.u32.totalorder %s3416_s30, %s4723_s11 }
  0x98   : > { %p3419_p3 = pnand %p3417_p1, %p4021_p8 }
  0x9a   : > { %p3420_p13 = pneg %p3419_p3 }
  0x9c   : > { %p3425_p2 = pnand %p3423_p0, %p3420_p13 }
  0x9e   : > { %3428 = shalt.err (!%p3425_p2)
}
  0x9f   : > { %s3429_s20 = scalar_lea.vmem %s572_s27, 16  ;;  %s3436_s21 = scalar_lea.vmem %s572_s27, 32 }
  0xa0   : > { %p3430_p5 = scmp.ne.s32.totalorder %s572_s27, %s3429_s20  ;;  %p3437_p10 = scmp.lt.s32.totalorder %s572_s27, %s572_s27 }
  0xa1   : > { %p3438_p11 = scmp.lt.s32.totalorder %s3436_s21, %s3429_s20 }
  0xa2   : > { %p3432_p7 = pnand %p3430_p5, %p4021_p8 }
  0xa3   : > { %p3439_p12 = por %p3438_p11, %p3437_p10 }
  0xa4   : > { %p3433_p9 = pneg %p3432_p7 }
  0xa6   : > { %p3440_p4 = pnand %p3439_p12, %p3433_p9 }
  0xa8   : > { %3443 = shalt.err (!%p3440_p4)
}
  0xa9   : > { %3112 = dma.hbm_to_vmem [thread:$0]  (!%p4007_p6), %s4723_s11, 16, %s572_s27, [#allocation21]  }
  0xaa   : > { %s3444_s30 = scalar_lea.hbm %s4725_s13, 256 }
  0xab   : > { %p3445_p1 = scmp.ne.s32.totalorder %s4725_s13, %s3444_s30  ;;  %p3451_p0 = scmp.lt.u32.totalorder %s3444_s30, %s4725_s13 }
  0xad   : > { %p3447_p3 = pnand %p3445_p1, %p4021_p8 }
  0xaf   : > { %p3448_p13 = pneg %p3447_p3 }
  0xb1   : > { %p3453_p2 = pnand %p3451_p0, %p3448_p13 }
  0xb3   : > { %3456 = shalt.err (!%p3453_p2)
}
  0xb4   : > { %s3457_s20 = scalar_lea.vmem %s593_s0, 256  ;;  %p3465_p10 = scmp.lt.s32.totalorder %s593_s0, %s593_s0 }
  0xb5   : > { %p3458_p5 = scmp.ne.s32.totalorder %s593_s0, %s3457_s20  ;;  %p3466_p11 = scmp.lt.s32.totalorder %s3457_s20, %s3457_s20 }
  0xb7   : > { %p3460_p7 = pnand %p3458_p5, %p4021_p8  ;;  %p3467_p12 = por %p3466_p11, %p3465_p10 }
  0xb9   : > { %p3461_p9 = pneg %p3460_p7 }
  0xbb   : > { %p3468_p4 = pnand %p3467_p12, %p3461_p9 }
  0xbd   : > { %3471 = shalt.err (!%p3468_p4)
}
  0xbe   : > { %3118 = dma.hbm_to_vmem [thread:$0]  (!%p4007_p6), %s4725_s13, 256, %s593_s0, [#allocation24], %s3857_s25, %s3857_s25, %s3858_s26  }
  0xbf   : > { %s3863_s3 = smov [#allocation26]   ;;  %s3864_s23 = smov [#allocation7]  }
  0xc0   : > { %s616_s17 = sshll.u32 %s3863_s3, 4  ;;  %s458_s24 = sshll.u32 %s3864_s23, 4  ;;  %s617_s17 = int_to_ptr.vmem [resolvable:$true] %s616_s17  ;;  %s459_s24 = int_to_ptr.vmem [resolvable:$true] %s458_s24 }
  0xc1   : > { %s3472_s19 = scalar_lea.hbm %s4727_s15, 512 }
  0xc2   : > { %p3473_p1 = scmp.ne.s32.totalorder %s4727_s15, %s3472_s19  ;;  %p3479_p0 = scmp.lt.u32.totalorder %s3472_s19, %s4727_s15 }
  0xc4   : > { %p3475_p3 = pnand %p3473_p1, %p4021_p8 }
  0xc6   : > { %p3476_p13 = pneg %p3475_p3 }
  0xc8   : > { %p3481_p2 = pnand %p3479_p0, %p3476_p13 }
  0xca   : > { %3484 = shalt.err (!%p3481_p2)
}
  0xcb   : > { %s3485_s0 = scalar_lea.vmem %s617_s17, 512  ;;  %p3493_p10 = scmp.lt.s32.totalorder %s617_s17, %s617_s17 }
  0xcc   : > { %p3486_p5 = scmp.ne.s32.totalorder %s617_s17, %s3485_s0  ;;  %p3494_p11 = scmp.lt.s32.totalorder %s3485_s0, %s3485_s0 }
  0xce   : > { %p3488_p7 = pnand %p3486_p5, %p4021_p8  ;;  %p3495_p12 = por %p3494_p11, %p3493_p10 }
  0xd0   : > { %p3489_p9 = pneg %p3488_p7 }
  0xd2   : > { %p3496_p4 = pnand %p3495_p12, %p3489_p9 }
  0xd4   : > { %3499 = shalt.err (!%p3496_p4)
}
  0xd5   : > { %3124 = dma.hbm_to_vmem [thread:$0]  (!%p4007_p6), %s4727_s15, 512, %s617_s17, [#allocation27], %s3857_s25, %s3857_s25, %s3858_s26  }
  0xd6   : > { %s4761_s2 = sld [smem:[#allocation48_spill]] }
  0xdc   : > { %s3500_s29 = scalar_lea.hbm %s4761_s2, 16 }
  0xdd   : > { %p3501_p1 = scmp.ne.s32.totalorder %s4761_s2, %s3500_s29  ;;  %p3507_p0 = scmp.lt.u32.totalorder %s3500_s29, %s4761_s2 }
  0xdf   : > { %p3503_p3 = pnand %p3501_p1, %p4021_p8 }
  0xe1   : > { %p3504_p13 = pneg %p3503_p3 }
  0xe3   : > { %p3509_p2 = pnand %p3507_p0, %p3504_p13 }
  0xe5   : > { %3512 = shalt.err (!%p3509_p2)
}
  0xe6   : > { %s3513_s27 = scalar_lea.vmem %s459_s24, 16  ;;  %s3520_s25 = scalar_lea.vmem %s459_s24, 32 }
  0xe7   : > { %p3514_p5 = scmp.ne.s32.totalorder %s459_s24, %s3513_s27  ;;  %p3521_p10 = scmp.lt.s32.totalorder %s459_s24, %s459_s24 }
  0xe8   : > { %p3522_p11 = scmp.lt.s32.totalorder %s3520_s25, %s3513_s27 }
  0xe9   : > { %p3516_p7 = pnand %p3514_p5, %p4021_p8 }
  0xea   : > { %p3523_p12 = por %p3522_p11, %p3521_p10 }
  0xeb   : > { %p3517_p9 = pneg %p3516_p7 }
  0xed   : > { %p3524_p4 = pnand %p3523_p12, %p3517_p9 }
  0xef   : > { %3527 = shalt.err (!%p3524_p4)
}
  0xf0   : > { %3085 = dma.hbm_to_vmem [thread:$0]  (!%p4007_p6), %s4761_s2, 16, %s459_s24, [#allocation6]  }
  0xf1   : > { %s3865_s0 = smov [#allocation10]   ;;  %s3528_s30 = scalar_lea.hbm %s4716_s4, 64 }
  0xf2   : > { %s481_s21 = sshll.u32 %s3865_s0, 4  ;;  %p3529_p1 = scmp.ne.s32.totalorder %s4716_s4, %s3528_s30  ;;  %s482_s21 = int_to_ptr.vmem [resolvable:$true] %s481_s21 }
  0xf3   : > { %p3535_p0 = scmp.lt.u32.totalorder %s3528_s30, %s4716_s4 }
  0xf4   : > { %p3531_p3 = pnand %p3529_p1, %p4021_p8 }
  0xf6   : > { %p3532_p13 = pneg %p3531_p3 }
  0xf8   : > { %p3537_p2 = pnand %p3535_p0, %p3532_p13 }
  0xfa   : > { %3540 = shalt.err (!%p3537_p2)
}
  0xfb   : > { %s3541_s24 = scalar_lea.vmem %s482_s21, 64  ;;  %p3549_p10 = scmp.lt.s32.totalorder %s482_s21, %s482_s21 }
  0xfc   : > { %p3542_p5 = scmp.ne.s32.totalorder %s482_s21, %s3541_s24  ;;  %p3550_p11 = scmp.lt.s32.totalorder %s3541_s24, %s3541_s24 }
  0xfe   : > { %p3544_p7 = pnand %p3542_p5, %p4021_p8  ;;  %p3551_p12 = por %p3550_p11, %p3549_p10 }
 0x100   : > { %p3545_p9 = pneg %p3544_p7 }
 0x102   : > { %p3552_p4 = pnand %p3551_p12, %p3545_p9 }
 0x104   : > { %3555 = shalt.err (!%p3552_p4)
}
 0x105   : > { %s3866_s20 = smov 16   ;;  %s3867_s27 = smov 1  }
 0x106   : > { %3091 = dma.hbm_to_vmem [thread:$0]  (!%p4007_p6), %s4716_s4, 64, %s482_s21, [#allocation9], %s3866_s20, %s3866_s20, %s3867_s27  }
 0x107   : > { %s3868_s17 = smov [#allocation13]   ;;  %s3869_s3 = smov [#allocation16]  }
 0x108   : > { %s507_s0 = sshll.u32 %s3868_s17, 4  ;;  %s533_s23 = sshll.u32 %s3869_s3, 4  ;;  %s508_s0 = int_to_ptr.vmem [resolvable:$true] %s507_s0  ;;  %s4236_s23 = int_to_ptr.vmem [resolvable:$true] %s533_s23 }
 0x109   : > { %s3556_s19 = scalar_lea.hbm %s4718_s6, 64 }
 0x10a   : > { %p3557_p1 = scmp.ne.s32.totalorder %s4718_s6, %s3556_s19  ;;  %p3563_p0 = scmp.lt.u32.totalorder %s3556_s19, %s4718_s6 }
 0x10c   : > { %p3559_p3 = pnand %p3557_p1, %p4021_p8 }
 0x10e   : > { %p3560_p13 = pneg %p3559_p3 }
 0x110   : > { %p3565_p2 = pnand %p3563_p0, %p3560_p13 }
 0x112   : > { %3568 = shalt.err (!%p3565_p2)
}
 0x113   : > { %s3569_s25 = scalar_lea.vmem %s508_s0, 64  ;;  %p3577_p10 = scmp.lt.s32.totalorder %s508_s0, %s508_s0 }
 0x114   : > { %p3570_p5 = scmp.ne.s32.totalorder %s508_s0, %s3569_s25  ;;  %p3578_p11 = scmp.lt.s32.totalorder %s3569_s25, %s3569_s25 }
 0x116   : > { %p3572_p7 = pnand %p3570_p5, %p4021_p8  ;;  %p3579_p12 = por %p3578_p11, %p3577_p10 }
 0x118   : > { %p3573_p9 = pneg %p3572_p7 }
 0x11a   : > { %p3580_p4 = pnand %p3579_p12, %p3573_p9 }
 0x11c   : > { %3583 = shalt.err (!%p3580_p4)
}
 0x11d   : > { %3097 = dma.hbm_to_vmem [thread:$0]  (!%p4007_p6), %s4718_s6, 64, %s508_s0, [#allocation12], %s3866_s20, %s3866_s20, %s3867_s27  }
 0x11e   : > { %s3584_s29 = scalar_lea.hbm %s4720_s8, 64 }
 0x11f   : > { %p3585_p1 = scmp.ne.s32.totalorder %s4720_s8, %s3584_s29  ;;  %p3591_p0 = scmp.lt.u32.totalorder %s3584_s29, %s4720_s8 }
 0x121   : > { %p3587_p3 = pnand %p3585_p1, %p4021_p8 }
 0x123   : > { %p3588_p13 = pneg %p3587_p3 }
 0x125   : > { %p3593_p2 = pnand %p3591_p0, %p3588_p13 }
 0x127   : > { %3596 = shalt.err (!%p3593_p2)
}
 0x128   : > { %s3597_s0 = scalar_lea.vmem %s4236_s23, 64  ;;  %p3605_p10 = scmp.lt.s32.totalorder %s4236_s23, %s4236_s23 }
 0x129   : > { %p3598_p5 = scmp.ne.s32.totalorder %s4236_s23, %s3597_s0  ;;  %p3606_p11 = scmp.lt.s32.totalorder %s3597_s0, %s3597_s0 }
 0x12b   : > { %p3600_p7 = pnand %p3598_p5, %p4021_p8  ;;  %p3607_p12 = por %p3606_p11, %p3605_p10 }
 0x12d   : > { %p3601_p9 = pneg %p3600_p7 }
 0x12f   : > { %p3608_p4 = pnand %p3607_p12, %p3601_p9 }
 0x131   : > { %3611 = shalt.err (!%p3608_p4)
}
 0x132   : > { %3103 = dma.hbm_to_vmem [thread:$0]  (!%p4007_p6), %s4720_s8, 64, %s4236_s23, [#allocation15], %s3866_s20, %s3866_s20, %s3867_s27  }
 0x133   : > { %s3870_s26 = smov [#allocation19]   ;;  %s3871_s3 = smov [#allocation22]  }
 0x134   : > { %s560_s17 = sshll.u32 %s3870_s26, 4  ;;  %s582_s30 = sshll.u32 %s3871_s3, 4  ;;  %s561_s17 = int_to_ptr.vmem [resolvable:$true] %s560_s17  ;;  %s4285_s30 = int_to_ptr.vmem [resolvable:$true] %s582_s30 }
 0x135   : > { %s3612_s28 = scalar_lea.hbm %s4722_s10, 16 }
 0x136   : > { %p3613_p1 = scmp.ne.s32.totalorder %s4722_s10, %s3612_s28  ;;  %p3619_p0 = scmp.lt.u32.totalorder %s3612_s28, %s4722_s10 }
 0x138   : > { %p3615_p3 = pnand %p3613_p1, %p4021_p8 }
 0x13a   : > { %p3616_p13 = pneg %p3615_p3 }
 0x13c   : > { %p3621_p2 = pnand %p3619_p0, %p3616_p13 }
 0x13e   : > { %3624 = shalt.err (!%p3621_p2)
}
 0x13f   : > { %s3625_s27 = scalar_lea.vmem %s561_s17, 16  ;;  %s3632_s23 = scalar_lea.vmem %s561_s17, 32 }
 0x140   : > { %p3626_p5 = scmp.ne.s32.totalorder %s561_s17, %s3625_s27  ;;  %p3633_p10 = scmp.lt.s32.totalorder %s561_s17, %s561_s17 }
 0x141   : > { %p3634_p11 = scmp.lt.s32.totalorder %s3632_s23, %s3625_s27 }
 0x142   : > { %p3628_p7 = pnand %p3626_p5, %p4021_p8 }
 0x143   : > { %p3635_p12 = por %p3634_p11, %p3633_p10 }
 0x144   : > { %p3629_p9 = pneg %p3628_p7 }
 0x146   : > { %p3636_p4 = pnand %p3635_p12, %p3629_p9 }
 0x148   : > { %3639 = shalt.err (!%p3636_p4)
}
 0x149   : > { %3109 = dma.hbm_to_vmem [thread:$0]  (!%p4007_p6), %s4722_s10, 16, %s561_s17, [#allocation18]  }
 0x14a   : > { %s3640_s29 = scalar_lea.hbm %s4724_s12, 16 }
 0x14b   : > { %p3641_p1 = scmp.ne.s32.totalorder %s4724_s12, %s3640_s29  ;;  %p3647_p0 = scmp.lt.u32.totalorder %s3640_s29, %s4724_s12 }
 0x14d   : > { %p3643_p3 = pnand %p3641_p1, %p4021_p8 }
 0x14f   : > { %p3644_p13 = pneg %p3643_p3 }
 0x151   : > { %p3649_p2 = pnand %p3647_p0, %p3644_p13 }
 0x153   : > { %3652 = shalt.err (!%p3649_p2)
}
 0x154   : > { %s3653_s17 = scalar_lea.vmem %s4285_s30, 16  ;;  %s3660_s0 = scalar_lea.vmem %s4285_s30, 32 }
 0x155   : > { %p3654_p5 = scmp.ne.s32.totalorder %s4285_s30, %s3653_s17  ;;  %p3661_p10 = scmp.lt.s32.totalorder %s4285_s30, %s4285_s30 }
 0x156   : > { %p3662_p11 = scmp.lt.s32.totalorder %s3660_s0, %s3653_s17 }
 0x157   : > { %p3656_p7 = pnand %p3654_p5, %p4021_p8 }
 0x158   : > { %p3663_p12 = por %p3662_p11, %p3661_p10 }
 0x159   : > { %p3657_p9 = pneg %p3656_p7 }
 0x15b   : > { %p3664_p4 = pnand %p3663_p12, %p3657_p9 }
 0x15d   : > { %3667 = shalt.err (!%p3664_p4)
}
 0x15e   : > { %3115 = dma.hbm_to_vmem [thread:$0]  (!%p4007_p6), %s4724_s12, 16, %s4285_s30, [#allocation21]  }
 0x15f   : > { %s3872_s23 = smov [#allocation25]   ;;  %s3873_s25 = smov [#allocation28]  }
 0x160   : > { %s606_s21 = sshll.u32 %s3872_s23, 4  ;;  %s630_s26 = sshll.u32 %s3873_s25, 4  ;;  %s607_s21 = int_to_ptr.vmem [resolvable:$true] %s606_s21  ;;  %s4329_s26 = int_to_ptr.vmem [resolvable:$true] %s630_s26 }
 0x161   : > { %s3668_s19 = scalar_lea.hbm %s4726_s14, 16 }
 0x162   : > { %p3669_p1 = scmp.ne.s32.totalorder %s4726_s14, %s3668_s19  ;;  %p3675_p0 = scmp.lt.u32.totalorder %s3668_s19, %s4726_s14 }
 0x164   : > { %p3671_p3 = pnand %p3669_p1, %p4021_p8 }
 0x166   : > { %p3672_p13 = pneg %p3671_p3 }
 0x168   : > { %p3677_p2 = pnand %p3675_p0, %p3672_p13 }
 0x16a   : > { %3680 = shalt.err (!%p3677_p2)
}
 0x16b   : > { %s3681_s17 = scalar_lea.vmem %s607_s21, 16  ;;  %s3688_s0 = scalar_lea.vmem %s607_s21, 32 }
 0x16c   : > { %p3682_p5 = scmp.ne.s32.totalorder %s607_s21, %s3681_s17  ;;  %p3689_p10 = scmp.lt.s32.totalorder %s607_s21, %s607_s21 }
 0x16d   : > { %p3690_p11 = scmp.lt.s32.totalorder %s3688_s0, %s3681_s17 }
 0x16e   : > { %p3684_p7 = pnand %p3682_p5, %p4021_p8 }
 0x16f   : > { %p3691_p12 = por %p3690_p11, %p3689_p10 }
 0x170   : > { %p3685_p9 = pneg %p3684_p7 }
 0x172   : > { %p3692_p4 = pnand %p3691_p12, %p3685_p9 }
 0x174   : > { %3695 = shalt.err (!%p3692_p4)
}
 0x175   : > { %3121 = dma.hbm_to_vmem [thread:$0]  (!%p4007_p6), %s4726_s14, 16, %s607_s21, [#allocation24]  }
 0x176   : > { %s3696_s3 = scalar_lea.hbm %s4728_s16, 16 }
 0x177   : > { %p3697_p1 = scmp.ne.s32.totalorder %s4728_s16, %s3696_s3  ;;  %p3703_p0 = scmp.lt.u32.totalorder %s3696_s3, %s4728_s16 }
 0x179   : > { %p3699_p3 = pnand %p3697_p1, %p4021_p8 }
 0x17b   : > { %p3700_p13 = pneg %p3699_p3 }
 0x17d   : > { %p3705_p2 = pnand %p3703_p0, %p3700_p13 }
 0x17f   : > { %3708 = shalt.err (!%p3705_p2)
}
 0x180   : > { %s3709_s21 = scalar_lea.vmem %s4329_s26, 16  ;;  %s3716_s24 = scalar_lea.vmem %s4329_s26, 32 }
 0x181   : > { %p3710_p5 = scmp.ne.s32.totalorder %s4329_s26, %s3709_s21  ;;  %p3717_p10 = scmp.lt.s32.totalorder %s4329_s26, %s4329_s26 }
 0x182   : > { %p3718_p11 = scmp.lt.s32.totalorder %s3716_s24, %s3709_s21 }
 0x183   : > { %p3712_p7 = pnand %p3710_p5, %p4021_p8 }
 0x184   : > { %p3719_p12 = por %p3718_p11, %p3717_p10 }
 0x185   : > { %p3713_p9 = pneg %p3712_p7 }
 0x187   : > { %p3720_p4 = pnand %p3719_p12, %p3713_p9 }
 0x189   : > { %3723 = shalt.err (!%p3720_p4)
}
 0x18a   : > { %s4762_s0 = sld [smem:[#allocation43_spill]]  ;;  %s4763_s20 = sld [smem:[#allocation42_spill]] }
 0x18b   : > { %s4764_s18 = sld [smem:[#allocation41_spill]]  ;;  %s4765_s27 = sld [smem:[#allocation40_spill]] }
 0x18c   : > { %s4766_s23 = sld [smem:[#allocation44_spill]] }
 0x18d   : > { %3127 = dma.hbm_to_vmem [thread:$0]  (!%p4007_p6), %s4728_s16, 16, %s4329_s26, [#allocation27]  }
 0x190   : > { %s2636_s1 = sadd.s32 4294967294, %s4762_s0   ;;  %s4375_s25 = sadd.s32 1, %s4762_s0  }
 0x191   : > { %s45_s3 = ssub.s32 %s4762_s0, %s4375_s25  ;;  %s48_s29 = sadd.s32 1, %s4763_s20 }
 0x192   : > { %p46_p8 = scmp.eq.s32.totalorder %s45_s3, 0  ;;  %p55_p1 = scmp.ne.s32.totalorder %s4763_s20, %s4764_s18 }
 0x193   : > { %p56_p3 = scmp.eq.s32.totalorder %s4762_s0, 0  ;;  %p61_p13 = scmp.ne.s32.totalorder %s4764_s18, %s4765_s27 }
 0x194   : > { %s4386_s19 = scalar_select %p46_p8, %s4763_s20, %s48_s29  }
 0x195   : > { %p4388_p0 = por %p56_p3, %p55_p1  ;;  %p4768_p2 = scmp.eq.s32.totalorder %s4766_s23, 0 }
 0x196   : > { %p421_p5 = scmp.eq.s32.totalorder %s4766_s23, 1  ;;  %p427_p7 = scmp.eq.s32.totalorder %s2636_s1, 1 }
 0x197   : > { %p4394_p6 = por %p4768_p2, %p61_p13  ;;  %p3152_p9 = scmp.lt.s32.totalorder %s4762_s0, 2 }
 0x198   : > { %s641_s22 = sand.u32 1, %s4763_s20   ;;  %p4401_p10 = por %p421_p5, %p55_p1 }
 0x199   : > { %p4405_p11 = por %p427_p7, %p61_p13  ;;  %s2655_s30 = sshll.u32 %s641_s22, 3 }
 0x19a   : > { %s4770_s21 = scalar_select %p4401_p10, 1, 0 }
 0x19b   : > { %s4771_s24 = scalar_select %p4405_p11, 1, 0 }
 0x19c   : > { %s2656_s17 = sshll.u32 %s4762_s0, 7  ;;  %s4772_s3 = sld [smem:[#allocation46_spill]] }
 0x19d   : > { %s645_s20 = scalar_lea.vmem [#allocation2], %s2655_s30  ;;  %p4419_p12 = pnand %p3152_p9, %p4388_p0 }
 0x19e   : > { %s652_s23 = sshll.u32 %s645_s20, 4  ;;  %s642_s0 = scalar_lea.sflag [#allocation3], %s641_s22  ;;  %s4415_s23 = int_to_ptr.vmem [resolvable:$true] %s652_s23 }
 0x19f   : > { %p3726_p8 = pneg %p4419_p12 }
 0x1a2   : > { %s4413_s29 = scalar_lea.hbm %s4772_s3, %s2656_s17  ;;  %s3729_s18 = scalar_lea.hbm %s4772_s3, 256 }
 0x1a3   : > { %s3724_s2 = scalar_lea.hbm %s4413_s29, 128  ;;  %p3730_p13 = scmp.lt.u32.totalorder %s4413_s29, %s4772_s3 }
 0x1a4   : > { %p3725_p4 = scmp.ne.s32.totalorder %s4413_s29, %s3724_s2  ;;  %p3731_p0 = scmp.lt.u32.totalorder %s3729_s18, %s3724_s2 }
 0x1a5   : > { %p3733_p5 = scmp.lt.u32.totalorder %s3724_s2, %s4413_s29 }
 0x1a6   : > { %p3727_p1 = pnand %p3726_p8, %p3725_p4  ;;  %p3732_p2 = por %p3731_p0, %p3730_p13 }
 0x1a8   : > { %p3728_p3 = pneg %p3727_p1  ;;  %p3734_p7 = por %p3733_p5, %p3732_p2 }
 0x1aa   : > { %p3735_p9 = pnand %p3734_p7, %p3728_p3 }
 0x1ac   : > { %3738 = shalt.err (!%p3735_p9)
}
 0x1ad   : > { %s3739_s22 = scalar_lea.vmem %s4415_s23, 128  ;;  %s3874_s20 = smov [#allocation2]  }
 0x1ae   : > { %p3740_p4 = scmp.ne.s32.totalorder %s4415_s23, %s3739_s22  ;;  %s3744_s30 = sshll.u32 %s3874_s20, 4  ;;  %s3745_s30 = int_to_ptr.vmem [resolvable:$false] %s3744_s30 }
 0x1af   : > { %s3746_s17 = scalar_lea.vmem %s3745_s30, 256  ;;  %p3747_p10 = scmp.lt.s32.totalorder %s4415_s23, %s3745_s30 }
 0x1b0   : > { %p3742_p1 = pnand %p3740_p4, %p3726_p8  ;;  %p3748_p13 = scmp.lt.s32.totalorder %s3746_s17, %s3739_s22 }
 0x1b2   : > { %p3743_p11 = pneg %p3742_p1  ;;  %p3749_p0 = por %p3748_p13, %p3747_p10 }
 0x1b4   : > { %p3750_p2 = pnand %p3749_p0, %p3743_p11 }
 0x1b6   : > { %3753 = shalt.err (!%p3750_p2)
}
 0x1b7   : > { %3131 = dma.hbm_to_vmem [thread:$0]  (!%p4419_p12), %s4413_s29, 128, %s4415_s23, %s642_s0  }
 0x1b8   : > { %s4774_s2 = sld [smem:[#allocation45_spill]] }
 0x1be   : > { %p4775_p3 = scmp.ne.s32.totalorder %s4774_s2, 0 }
 0x1bf   : > { %s4776_s18 = sld [smem:[#allocation41_spill]] (!%p4775_p3) }
 0x1c0   : > { %661 = sbr.rel (%p4775_p3) target bundleno = 2795 (0xaeb), region = 88 }
 0x1c5   : > { %s4451_s28 = sand.u32 (!%p4775_p3), 1, %s4776_s18  }
 0x1c6   : > { %s2658_s27 = sshll.u32 (!%p4775_p3), %s4451_s28, 3  ;;  %s664_s22 = scalar_lea.sflag (!%p4775_p3), [#allocation3], %s4451_s28 }
 0x1c7   : > { %s667_s20 = scalar_lea.vmem [#allocation2], %s2658_s27 }
 0x1c8   : > { %3799 = dma.done.wait (%p4394_p6), %s664_s22, 128  }
 0x1c9   : > { %3801 = vsyncadd (%p4394_p6), %s664_s22, 4294967168  ;;  %s4777_s29 = sld [smem:[#allocation44_spill]] }
 0x1cf   : > { %p4778_p10 = scmp.eq.s32.totalorder %s4777_s29, 0 }
 0x1d1   : > { %3803 = dma.done.wait (%p4778_p10), [#allocation6], 32   ;;  %p4779_p11 = pmov %p4778_p10 }
 0x1d2   : > { %p4780_p12 = pmov %p4778_p10 }
 0x1d3   : > { %3805 = vsyncadd (%p4779_p11), [#allocation6], 4294967264 }
 0x1d4   : > { %3807 = dma.done.wait (%p4780_p12), [#allocation9], 1088   ;;  %p4781_p8 = pmov %p4778_p10 }
 0x1d6   : > { %3809 = vsyncadd (%p4781_p8), [#allocation9], 4294966208  ;;  %p4782_p5 = pmov %p4781_p8 }
 0x1d8   : > { %3811 = dma.done.wait (%p4782_p5), [#allocation12], 1088   ;;  %p4783_p7 = pmov %p4782_p5 }
 0x1d9   : > { %p4784_p6 = pmov %p4782_p5 }
 0x1da   : > { %3813 = vsyncadd (%p4783_p7), [#allocation12], 4294966208 }
 0x1db   : > { %3815 = dma.done.wait (%p4784_p6), [#allocation15], 1088   ;;  %p4785_p9 = pmov %p4782_p5 }
 0x1dc   : > { %p4786_p4 = pmov %p4782_p5 }
 0x1dd   : > { %3817 = vsyncadd (%p4785_p9), [#allocation15], 4294966208 }
 0x1de   : > { %3819 = dma.done.wait (%p4786_p4), [#allocation18], 272   ;;  %p4787_p1 = pmov %p4786_p4 }
 0x1e0   : > { %3821 = vsyncadd (%p4787_p1), [#allocation18], 4294967024  ;;  %p4788_p13 = pmov %p4787_p1 }
 0x1e1   : > { %p4789_p0 = pmov %p4787_p1 }
 0x1e2   : > { %3823 = dma.done.wait (%p4788_p13), [#allocation21], 32  }
 0x1e3   : > { %3825 = vsyncadd (%p4789_p0), [#allocation21], 4294967264  ;;  %p4790_p2 = pmov %p4789_p0 }
 0x1e4   : > { %p4791_p3 = pmov %p4789_p0 }
 0x1e5   : > { %3827 = dma.done.wait (%p4790_p2), [#allocation24], 272  }
 0x1e6   : > { %3829 = vsyncadd (%p4791_p3), [#allocation24], 4294967024  ;;  %p4792_p10 = pmov %p4789_p0 }
 0x1e7   : > { %p4793_p11 = pmov %p4789_p0 }
 0x1e8   : > { %3831 = dma.done.wait (%p4792_p10), [#allocation27], 528  }
 0x1e9   : > { %3833 = vsyncadd (%p4793_p11), [#allocation27], 4294966768  ;;  %vm803_vm0 = vcmask 261120   ;;  %v4493_v0 = vld [vmem:[%s667_s20] sm:$0xff]  ;;  %v3224_v7 = vld [vmem:[#allocation8] sm:$0xff]   ;;  %v3875_v9 = vmov 0.0  }
 0x1ea   : > { %v804_v1 = vsel %vm803_vm0, %v4493_v0, 0.0  ;;  %v3225_v8 = vld [vmem:[#allocation8 + $0x10] sm:$0xff]   ;;  %2823 = vmatprep.subr.bf16.mxu0 %v3875_v9  ;;  %2831 = vmatprep.subr.bf16.mxu1 %v3875_v9  ;;  %v3226_v10 = vld [vmem:[#allocation8 + $0x8] sm:$0xff]   ;;  %v3227_v11 = vld [vmem:[#allocation8 + $0x18] sm:$0xff]   ;;  %vm3876_vm1 = vmmov 0   ;;  %vm1596_vm2 = vcmask 64512  }
 0x1eb   : > { %805 = vadd.xlane.f32.xlu0 %v804_v1  ;;  %2824 = vmatpush3.bf16.msra.mxu0 %v3224_v7  ;;  %v2676_v16 = vld [vmem:[#allocation5] ss:$0 sm:$0xff]  ;;  %v2677_v18 = vld [vmem:[#allocation7] ss:$0 sm:$0xff]  ;;  %v3228_v21 = vld [vmem:[#allocation8 + $0x20] sm:$0xff]   ;;  %vm1832_vm3 = vcmask 1043456  }
 0x1ec   : > { %2832 = vmatpush3.bf16.msra.mxu1 %v3225_v8  ;;  %2825 = vmatprep.subr.bf16.mxu0 %v3875_v9  ;;  %v3229_v22 = vld [vmem:[#allocation8 + $0x30] sm:$0xff]   ;;  %v3230_v24 = vld [vmem:[#allocation8 + $0x28] sm:$0xff]   ;;  %v3231_v25 = vld [vmem:[#allocation8 + $0x38] sm:$0xff]   ;;  %vm2354_vm4 = vcmask 523264   ;;  %s2752_s26 = sshll.u32 %s4777_s29, 7  ;;  %s781_s23 = scalar_lea.vmem [#allocation29], %s2658_s27 }
 0x1ed   : > { %2833 = vmatprep.subr.bf16.mxu1 %v3875_v9  ;;  %2827 = vmatprep.mubr.msk.bf16.mxu0 %vm3876_vm1, %v3875_v9  ;;  %v3232_v26 = vld [vmem:[#allocation11] sm:$0xff]   ;;  %v3233_v27 = vld [vmem:[#allocation11 + $0x10] sm:$0xff]   ;;  %v3234_v28 = vld [vmem:[#allocation11 + $0x8] sm:$0xff]   ;;  %s2414_s1 = sshll.u32 %s781_s23, 4  ;;  %s4794_s17 = sld [smem:[#allocation50_spill]]  ;;  %s4669_s1 = int_to_ptr.vmem [resolvable:$true] %s2414_s1 }
 0x1ee   : > { %2835 = vmatprep.mubr.msk.bf16.mxu1 %vm3876_vm1, %v3875_v9  ;;  %v3235_v29 = vld [vmem:[#allocation11 + $0x18] sm:$0xff]   ;;  %v3236_v30 = vld [vmem:[#allocation11 + $0x20] sm:$0xff]   ;;  %v3237_v31 = vld [vmem:[#allocation11 + $0x30] sm:$0xff]   ;;  %s2401_s18 = scalar_lea.sflag [#allocation4], %s4451_s28  ;;  %s3754_s27 = scalar_lea.vmem %s4669_s1, 128 }
 0x1ef   : > { %2826 = vmatpush3.bf16.msra.mxu0 %v3226_v10  ;;  %v3238_v32 = vld [vmem:[#allocation11 + $0x28] sm:$0xff]   ;;  %v3239_v33 = vld [vmem:[#allocation11 + $0x38] sm:$0xff]   ;;  %v2694_v58 = vld [vmem:[#allocation13] ss:$0 sm:$0xff]  ;;  %p3755_p12 = scmp.ne.s32.totalorder %s4669_s1, %s3754_s27  ;;  %p4795_p8 = scmp.ne.s32.totalorder %s4770_s21, 0 }
 0x1f0   : > { %2834 = vmatpush3.bf16.msra.mxu1 %v3227_v11  ;;  %2839 = vmatprep.subr.bf16.mxu0 %v3875_v9  ;;  %v3240_v34 = vld [vmem:[#allocation14] sm:$0xff]   ;;  %v3241_v35 = vld [vmem:[#allocation14 + $0x10] sm:$0xff]   ;;  %v3242_v36 = vld [vmem:[#allocation14 + $0x8] sm:$0xff]   ;;  %s3877_s22 = smov [#allocation29]  }
 0x1f1   : > { %2847 = vmatprep.subr.bf16.mxu1 %v3875_v9  ;;  %v3243_v37 = vld [vmem:[#allocation14 + $0x18] sm:$0xff]   ;;  %v3244_v38 = vld [vmem:[#allocation14 + $0x20] sm:$0xff]   ;;  %v3245_v39 = vld [vmem:[#allocation14 + $0x30] sm:$0xff]   ;;  %p3756_p5 = pnand %p3755_p12, %p4795_p8  ;;  %s3758_s20 = sshll.u32 %s3877_s22, 4  ;;  %s3759_s20 = int_to_ptr.vmem [resolvable:$false] %s3758_s20 }
 0x1f2   : > { %v3246_v40 = vld [vmem:[#allocation14 + $0x28] sm:$0xff]   ;;  %v3247_v41 = vld [vmem:[#allocation14 + $0x38] sm:$0xff]   ;;  %s3760_s29 = scalar_lea.vmem %s3759_s20, 256  ;;  %p3761_p6 = scmp.lt.s32.totalorder %s4669_s1, %s3759_s20 }
 0x1f3   : > { %v2695_v59 = vld [vmem:[#allocation13 + $0x1] ss:$0 sm:$0xff]  ;;  %v2678_v60 = vld [vmem:[#allocation10] ss:$0 sm:$0xff]  ;;  %v2679_v61 = vld [vmem:[#allocation10 + $0x1] ss:$0 sm:$0xff]  ;;  %s4667_s2 = scalar_lea.hbm %s4794_s17, %s2752_s26  ;;  %p3757_p7 = pneg %p3756_p5 }
 0x1f4   : > { %p3762_p9 = scmp.lt.s32.totalorder %s3760_s29, %s3754_s27 }
 0x1f6   : > { %p3763_p4 = por %p3762_p9, %p3761_p6 }
 0x1f8   : > { %p3764_p1 = pnand %p3763_p4, %p3757_p7 }
 0x278   : > { %v806_v2 = vpop.xlane.xlu0 %805 }
 0x279   : > { %v808_v3 = vmul.f32 0.03125, %v806_v2 }
 0x27b   : > { %v809_v4 = vsub.f32 %v4493_v0, %v808_v3 }
 0x27d   : > { %v810_v5 = vmul.f32 %v809_v4, %v809_v4 }
 0x27f   : > { %v811_v6 = vsel %vm803_vm0, %v810_v5, 0.0 }
 0x280   : > { %812 = vadd.xlane.f32.xlu0 %v811_v6 }
 0x30d   : > { %v813_v12 = vpop.xlane.xlu0 %812 }
 0x30e   : > { %v814_v13 = vmul.f32 0.03125, %v813_v12 }
 0x310   : > { %v815_v14 = vadd.f32 1e-06, %v814_v13 }
 0x312   : > { %3254 = vrsqrt.f32 %v815_v14 }
 0x31c   : > { %v3255_v15 = vpop.eup %3254 }
 0x31d   : > { %v817_v17 = vmul.f32 %v3255_v15, %v809_v4 }
 0x31f   : > { %v824_v19 = vmul.f32 %v2676_v16, %v817_v17  ;;  %v2696_v16 = vld [vmem:[#allocation13 + $0x2] ss:$0 sm:$0xff] }
 0x321   : > { %v831_v20 = vadd.f32 %v2677_v18, %v824_v19  ;;  %v2697_v19 = vld [vmem:[#allocation13 + $0x3] ss:$0 sm:$0xff] }
 0x323   : > { %v4509_v23 = vpack.c.bf16 %v831_v20, %v831_v20  ;;  %v2680_v20 = vld [vmem:[#allocation10 + $0x2] ss:$0 sm:$0xff] }
 0x325   : > { %2828 = vmatmul.mubr.msk.bf16.vlgmr.msra.gmra.mrb[0].mxu0 %vm803_vm0, %v4509_v23  ;;  %2836 = vmatmul.mubr.msk.bf16.vlgmr.msra.gmra.mrb[0].mxu1 %vm803_vm0, %v4509_v23 }
 0x326   : > { %2840 = vmatpush3.bf16.msra.mxu0 %v3228_v21  ;;  %2848 = vmatpush3.bf16.msra.mxu1 %v3229_v22  ;;  %v2681_v21 = vld [vmem:[#allocation10 + $0x3] ss:$0 sm:$0xff] }
 0x327   : > { %2841 = vmatprep.subr.bf16.mxu0 %v3875_v9  ;;  %2849 = vmatprep.subr.bf16.mxu1 %v3875_v9 }
 0x328   : > { %2843 = vmatprep.mubr.msk.bf16.mxu0 %vm3876_vm1, %v3875_v9  ;;  %2851 = vmatprep.mubr.msk.bf16.mxu1 %vm3876_vm1, %v3875_v9 }
 0x32a   : > { %2842 = vmatpush3.bf16.msra.mxu0 %v3230_v24  ;;  %2850 = vmatpush3.bf16.msra.mxu1 %v3231_v25 }
 0x32b   : > { %2855 = vmatprep.subr.bf16.mxu0 %v3875_v9  ;;  %2863 = vmatprep.subr.bf16.mxu1 %v3875_v9 }
 0x32d   : > { %2844 = vmatmul.mubr.msk.bf16.vlgmr.msra.gmra.mrb[4].mxu0 %vm803_vm0, %v4509_v23  ;;  %2852 = vmatmul.mubr.msk.bf16.vlgmr.msra.gmra.mrb[4].mxu1 %vm803_vm0, %v4509_v23 }
 0x32e   : > { %2856 = vmatpush3.bf16.msra.mxu0 %v3232_v26  ;;  %2864 = vmatpush3.bf16.msra.mxu1 %v3233_v27 }
 0x32f   : > { %2857 = vmatprep.subr.bf16.mxu0 %v3875_v9  ;;  %2865 = vmatprep.subr.bf16.mxu1 %v3875_v9 }
 0x330   : > { %2859 = vmatprep.mubr.msk.bf16.mxu0 %vm3876_vm1, %v3875_v9  ;;  %2867 = vmatprep.mubr.msk.bf16.mxu1 %vm3876_vm1, %v3875_v9 }
 0x332   : > { %2858 = vmatpush3.bf16.msra.mxu0 %v3234_v28  ;;  %2866 = vmatpush3.bf16.msra.mxu1 %v3235_v29 }
 0x333   : > { %2871 = vmatprep.subr.bf16.mxu0 %v3875_v9  ;;  %2879 = vmatprep.subr.bf16.mxu1 %v3875_v9 }
 0x335   : > { %2860 = vmatmul.mubr.msk.bf16.vlgmr.msra.gmra.mrb[8].mxu0 %vm803_vm0, %v4509_v23  ;;  %2868 = vmatmul.mubr.msk.bf16.vlgmr.msra.gmra.mrb[8].mxu1 %vm803_vm0, %v4509_v23 }
 0x336   : > { %2872 = vmatpush3.bf16.msra.mxu0 %v3236_v30  ;;  %2880 = vmatpush3.bf16.msra.mxu1 %v3237_v31 }
 0x337   : > { %2873 = vmatprep.subr.bf16.mxu0 %v3875_v9  ;;  %2881 = vmatprep.subr.bf16.mxu1 %v3875_v9 }
 0x338   : > { %2875 = vmatprep.mubr.msk.bf16.mxu0 %vm3876_vm1, %v3875_v9  ;;  %2883 = vmatprep.mubr.msk.bf16.mxu1 %vm3876_vm1, %v3875_v9 }
 0x33a   : > { %2874 = vmatpush3.bf16.msra.mxu0 %v3238_v32  ;;  %2882 = vmatpush3.bf16.msra.mxu1 %v3239_v33 }
 0x33b   : > { %2887 = vmatprep.subr.bf16.mxu0 %v3875_v9  ;;  %2895 = vmatprep.subr.bf16.mxu1 %v3875_v9 }
 0x33d   : > { %2876 = vmatmul.mubr.msk.bf16.vlgmr.msra.gmra.mrb[12].mxu0 %vm803_vm0, %v4509_v23  ;;  %2884 = vmatmul.mubr.msk.bf16.vlgmr.msra.gmra.mrb[12].mxu1 %vm803_vm0, %v4509_v23 }
 0x33e   : > { %2888 = vmatpush3.bf16.msra.mxu0 %v3240_v34  ;;  %2896 = vmatpush3.bf16.msra.mxu1 %v3241_v35 }
 0x33f   : > { %2889 = vmatprep.subr.bf16.mxu0 %v3875_v9  ;;  %2897 = vmatprep.subr.bf16.mxu1 %v3875_v9 }
 0x340   : > { %2891 = vmatprep.mubr.msk.bf16.mxu0 %vm3876_vm1, %v3875_v9  ;;  %2899 = vmatprep.mubr.msk.bf16.mxu1 %vm3876_vm1, %v3875_v9 }
 0x342   : > { %2890 = vmatpush3.bf16.msra.mxu0 %v3242_v36  ;;  %2898 = vmatpush3.bf16.msra.mxu1 %v3243_v37 }
 0x343   : > { %2903 = vmatprep.subr.bf16.mxu0 %v3875_v9  ;;  %2911 = vmatprep.subr.bf16.mxu1 %v3875_v9 }
 0x345   : > { %2892 = vmatmul.mubr.msk.bf16.vlgmr.msra.gmra.mrb[16].mxu0 %vm803_vm0, %v4509_v23  ;;  %2900 = vmatmul.mubr.msk.bf16.vlgmr.msra.gmra.mrb[16].mxu1 %vm803_vm0, %v4509_v23 }
 0x346   : > { %2904 = vmatpush3.bf16.msra.mxu0 %v3244_v38  ;;  %2912 = vmatpush3.bf16.msra.mxu1 %v3245_v39 }
 0x347   : > { %2905 = vmatprep.subr.bf16.mxu0 %v3875_v9  ;;  %2913 = vmatprep.subr.bf16.mxu1 %v3875_v9 }
 0x348   : > { %2907 = vmatprep.mubr.msk.bf16.mxu0 %vm3876_vm1, %v3875_v9  ;;  %2915 = vmatprep.mubr.msk.bf16.mxu1 %vm3876_vm1, %v3875_v9 }
 0x34a   : > { %2906 = vmatpush3.bf16.msra.mxu0 %v3246_v40  ;;  %2914 = vmatpush3.bf16.msra.mxu1 %v3247_v41  ;;  %v2710_v40 = vld [vmem:[#allocation16] ss:$0 sm:$0xff]  ;;  %v2711_v41 = vld [vmem:[#allocation16 + $0x1] ss:$0 sm:$0xff] }
 0x34b   : > { %2919 = vmatprep.subr.bf16.mxu0 %v3875_v9  ;;  %2925 = vmatprep.subr.bf16.mxu1 %v3875_v9 }
 0x34d   : > { %2908 = vmatmul.mubr.msk.bf16.vlgmr.msra.gmra.mrb[20].mxu0 %vm803_vm0, %v4509_v23  ;;  %2916 = vmatmul.mubr.msk.bf16.vlgmr.msra.gmra.mrb[20].mxu1 %vm803_vm0, %v4509_v23 }
 0x34e   : > { %2921 = vmatprep.mubr.msk.bf16.mxu0 %vm3876_vm1, %v3875_v9  ;;  %2927 = vmatprep.mubr.msk.bf16.mxu1 %vm3876_vm1, %v3875_v9 }
 0x3f8   : > { %v922_v42 = vpop.f32.mrb[0].mxu0  ;;  %v974_v43 = vpop.f32.mrb[0].mxu1 }
 0x3f9   : > { %v2829_v44 = vpop.f32.mrb[1].mxu0  ;;  %v2837_v45 = vpop.f32.mrb[1].mxu1  ;;  %v923_v5 = vadd.f32 %v2678_v60, %v922_v42  ;;  %v975_v6 = vadd.f32 %v2679_v61, %v974_v43 }
 0x3fa   : > { %v925_v46 = vpop.f32.mrb[2].mxu0  ;;  %v977_v47 = vpop.f32.mrb[2].mxu1 }
 0x3fb   : > { %v2830_v48 = vpop.f32.mrb[3].mxu0  ;;  %v2838_v49 = vpop.f32.mrb[3].mxu1  ;;  %v1580_v17 = vmul.f32 0.35355338, %v923_v5  ;;  %v1581_v18 = vmul.f32 0.35355338, %v975_v6 }
 0x3fd   : > { %v1584_v28 = vpack.c.bf16 %v1580_v17, %v1580_v17  ;;  %v1585_v29 = vpack.c.bf16 %v1581_v18, %v1581_v18 }
 0x400   : > { %v1026_v50 = vpop.f32.mrb[4].mxu0  ;;  %v1078_v51 = vpop.f32.mrb[4].mxu1 }
 0x401   : > { %v2845_v52 = vpop.f32.mrb[5].mxu0  ;;  %v2853_v53 = vpop.f32.mrb[5].mxu1  ;;  %v1027_v32 = vadd.f32 %v2680_v20, %v1026_v50  ;;  %v1079_v33 = vadd.f32 %v2681_v21, %v1078_v51 }
 0x402   : > { %v1029_v54 = vpop.f32.mrb[6].mxu0  ;;  %v1081_v55 = vpop.f32.mrb[6].mxu1 }
 0x403   : > { %v2846_v56 = vpop.f32.mrb[7].mxu0  ;;  %v2854_v57 = vpop.f32.mrb[7].mxu1  ;;  %v1582_v42 = vmul.f32 0.35355338, %v1027_v32  ;;  %v1583_v43 = vmul.f32 0.35355338, %v1079_v33 }
 0x405   : > { %v1586_v52 = vpack.c.bf16 %v1582_v42, %v1582_v42  ;;  %v1587_v53 = vpack.c.bf16 %v1583_v43, %v1583_v43 }
 0x408   : > { %v1170_v62 = vpop.f32.mrb[8].mxu0  ;;  %v1222_v63 = vpop.f32.mrb[8].mxu1 }
 0x409   : > { %v1171_v1 = vadd.f32 %v2694_v58, %v1170_v62  ;;  %v1223_v2 = vadd.f32 %v2695_v59, %v1222_v63  ;;  %v2861_v3 = vpop.f32.mrb[9].mxu0  ;;  %v2869_v4 = vpop.f32.mrb[9].mxu1 }
 0x40a   : > { %v1173_v7 = vpop.f32.mrb[10].mxu0  ;;  %v1225_v8 = vpop.f32.mrb[10].mxu1 }
 0x40b   : > { %v1588_v10 = vpack.c.bf16 %v1171_v1, %v1171_v1  ;;  %v1589_v11 = vpack.c.bf16 %v1223_v2, %v1223_v2  ;;  %v2862_v12 = vpop.f32.mrb[11].mxu0  ;;  %v2870_v13 = vpop.f32.mrb[11].mxu1 }
 0x40d   : > { %v1601_v14 = vsel %vm1596_vm2, %v1588_v10, 0  ;;  %v1647_v15 = vsel %vm1596_vm2, %v1589_v11, 0 }
 0x40e   : > { %2920 = vmatpush3.bf16.xpose.msra.mxu0 %v1601_v14  ;;  %2926 = vmatpush3.bf16.xpose.msra.mxu1 %v1647_v15 }
 0x40f   : > { %2931 = vmatprep.subr.bf16.mxu0 %v3875_v9  ;;  %2937 = vmatprep.subr.bf16.mxu1 %v3875_v9 }
 0x410   : > { %v1274_v22 = vpop.f32.mrb[12].mxu0  ;;  %v1326_v23 = vpop.f32.mrb[12].mxu1 }
 0x411   : > { %v1275_v24 = vadd.f32 %v2696_v16, %v1274_v22  ;;  %v1327_v25 = vadd.f32 %v2697_v19, %v1326_v23  ;;  %v2877_v26 = vpop.f32.mrb[13].mxu0  ;;  %v2885_v27 = vpop.f32.mrb[13].mxu1 }
 0x412   : > { %v1277_v30 = vpop.f32.mrb[14].mxu0  ;;  %v1329_v31 = vpop.f32.mrb[14].mxu1 }
 0x413   : > { %v1590_v34 = vpack.c.bf16 %v1275_v24, %v1275_v24  ;;  %v1591_v35 = vpack.c.bf16 %v1327_v25, %v1327_v25  ;;  %v2878_v36 = vpop.f32.mrb[15].mxu0  ;;  %v2886_v37 = vpop.f32.mrb[15].mxu1 }
 0x415   : > { %v1693_v38 = vsel %vm1596_vm2, %v1590_v34, 0  ;;  %v1739_v39 = vsel %vm1596_vm2, %v1591_v35, 0  ;;  %2922 = vmatmul.mubr.msk.bf16.vlgmr.msra.gmra.mrb[24].mxu0 %vm1596_vm2, %v1584_v28  ;;  %2928 = vmatmul.mubr.msk.bf16.vlgmr.msra.gmra.mrb[24].mxu1 %vm1596_vm2, %v1585_v29 }
 0x416   : > { %2932 = vmatpush3.bf16.xpose.msra.mxu0 %v1693_v38  ;;  %2938 = vmatpush3.bf16.xpose.msra.mxu1 %v1739_v39 }
 0x417   : > { %2933 = vmatprep.mubr.msk.bf16.mxu0 %vm3876_vm1, %v3875_v9  ;;  %2939 = vmatprep.mubr.msk.bf16.mxu1 %vm3876_vm1, %v3875_v9 }
 0x418   : > { %v1418_v44 = vpop.f32.mrb[16].mxu0  ;;  %v1470_v45 = vpop.f32.mrb[16].mxu1  ;;  %2943 = vmatprep.subr.bf16.mxu0 %v3875_v9  ;;  %2949 = vmatprep.subr.bf16.mxu1 %v3875_v9 }
 0x419   : > { %v1419_v46 = vadd.f32 %v2710_v40, %v1418_v44  ;;  %v1471_v47 = vadd.f32 %v2711_v41, %v1470_v45  ;;  %v2893_v48 = vpop.f32.mrb[17].mxu0  ;;  %v2901_v49 = vpop.f32.mrb[17].mxu1 }
 0x41a   : > { %v1421_v50 = vpop.f32.mrb[18].mxu0  ;;  %v1473_v51 = vpop.f32.mrb[18].mxu1  ;;  %v2712_v48 = vld [vmem:[#allocation16 + $0x2] ss:$0 sm:$0xff] }
 0x41b   : > { %v1592_v54 = vpack.c.bf16 %v1419_v46, %v1419_v46  ;;  %v1593_v55 = vpack.c.bf16 %v1471_v47, %v1471_v47  ;;  %v2894_v56 = vpop.f32.mrb[19].mxu0  ;;  %v2902_v57 = vpop.f32.mrb[19].mxu1  ;;  %v2713_v51 = vld [vmem:[#allocation16 + $0x3] ss:$0 sm:$0xff] }
 0x41d   : > { %v1834_v58 = vsel %vm1832_vm3, %v1592_v54, 0  ;;  %v1880_v59 = vsel %vm1832_vm3, %v1593_v55, 0  ;;  %2934 = vmatmul.mubr.msk.bf16.vlgmr.msra.gmra.mrb[28].mxu0 %vm1596_vm2, %v1586_v52  ;;  %2940 = vmatmul.mubr.msk.bf16.vlgmr.msra.gmra.mrb[28].mxu1 %vm1596_vm2, %v1587_v53 }
 0x41e   : > { %2944 = vmatpush3.bf16.msra.mxu0 %v1834_v58  ;;  %2950 = vmatpush3.bf16.msra.mxu1 %v1880_v59 }
 0x41f   : > { %2945 = vmatprep.mubr.msk.bf16.mxu0 %vm3876_vm1, %v3875_v9  ;;  %2955 = vmatprep.subr.bf16.mxu0 %v3875_v9 }
 0x420   : > { %v4600_v60 = vpop.f32.mrb[20].mxu0  ;;  %v4602_v61 = vpop.f32.mrb[20].mxu1  ;;  %2951 = vmatprep.mubr.msk.bf16.mxu1 %vm3876_vm1, %v3875_v9  ;;  %2961 = vmatprep.subr.bf16.mxu1 %v3875_v9 }
 0x421   : > { %v2909_v62 = vpop.f32.mrb[21].mxu0  ;;  %v2917_v63 = vpop.f32.mrb[21].mxu1  ;;  %v1523_v49 = vadd.f32 %v2712_v48, %v4600_v60  ;;  %v1575_v55 = vadd.f32 %v2713_v51, %v4602_v61 }
 0x422   : > { %v1525_v1 = vpop.f32.mrb[22].mxu0  ;;  %v1577_v2 = vpop.f32.mrb[22].mxu1 }
 0x423   : > { %v2910_v3 = vpop.f32.mrb[23].mxu0  ;;  %v2918_v4 = vpop.f32.mrb[23].mxu1  ;;  %v1594_v54 = vpack.c.bf16 %v1523_v49, %v1523_v49  ;;  %v1595_v62 = vpack.c.bf16 %v1575_v55, %v1575_v55 }
 0x424   : > { %v2018_v3 = vld [vmem:[#allocation17] sm:$0xf] }
 0x425   : > { %v1926_v59 = vsel %vm1832_vm3, %v1594_v54, 0  ;;  %v1972_v61 = vsel %vm1832_vm3, %v1595_v62, 0 }
 0x4e8   : > { %v1637_v5 = vpop.f32.mrb[24].mxu0  ;;  %v1683_v6 = vpop.f32.mrb[24].mxu1 }
 0x4e9   : > { %v2923_v7 = vpop.f32.mrb[25].mxu0  ;;  %v2929_v8 = vpop.f32.mrb[25].mxu1  ;;  %v1781_v10 = vsel %vm1596_vm2, %v1637_v5, -inf  ;;  %v1784_v15 = vsel %vm1596_vm2, %v1683_v6, -inf }
 0x4ea   : > { %v1686_v11 = vpop.f32.mrb[26].mxu1  ;;  %1782 = vmax.xlane.f32.xlu1 %v1781_v10  ;;  %v1640_v12 = vpop.f32.mrb[26].mxu0  ;;  %v2026_v7 = vsel %vm1832_vm3, %v2018_v3, 0  ;;  %v2019_v10 = vld [vmem:[#allocation17 + $0x4] sm:$0xf] }
 0x4eb   : > { %v2924_v13 = vpop.f32.mrb[27].mxu0  ;;  %v2930_v14 = vpop.f32.mrb[27].mxu1  ;;  %v2072_v11 = vsel %vm1832_vm3, %v2019_v10, 0  ;;  %v2020_v12 = vld [vmem:[#allocation17 + $0x8] sm:$0xf] }
 0x4ee   : > { %1785 = vmax.xlane.f32.xlu1 %v1784_v15 }
 0x4f0   : > { %v1729_v16 = vpop.f32.mrb[28].mxu0  ;;  %v1775_v17 = vpop.f32.mrb[28].mxu1 }
 0x4f1   : > { %v2935_v18 = vpop.f32.mrb[29].mxu0  ;;  %v2941_v19 = vpop.f32.mrb[29].mxu1  ;;  %v1790_v20 = vsel %vm1596_vm2, %v1775_v17, -inf  ;;  %v1787_v21 = vsel %vm1596_vm2, %v1729_v16, -inf }
 0x4f2   : > { %v1778_v22 = vpop.f32.mrb[30].mxu1  ;;  %1791 = vmax.xlane.f32.xlu1 %v1790_v20  ;;  %1788 = vmax.xlane.f32.xlu0 %v1787_v21  ;;  %v1732_v23 = vpop.f32.mrb[30].mxu0  ;;  %v2021_v18 = vld [vmem:[#allocation17 + $0xc] sm:$0xf] }
 0x4f3   : > { %v2936_v24 = vpop.f32.mrb[31].mxu0  ;;  %v2942_v25 = vpop.f32.mrb[31].mxu1  ;;  %v2164_v23 = vsel %vm1832_vm3, %v2021_v18, 0 }
 0x577   : > { %v1783_v26 = vpop.xlane.xlu1 %1782 }
 0x578   : > { %v1793_v27 = vsub.f32 %v1637_v5, %v1783_v26 }
 0x57a   : > { %v1797_v28 = vmul.f32 1.442695, %v1793_v27 }
 0x57b   : > { %v1786_v29 = vpop.xlane.xlu1 %1785 }
 0x57c   : > { %3256 = vpow2.f32 %v1797_v28  ;;  %v1794_v30 = vsub.f32 %v1683_v6, %v1786_v29 }
 0x57e   : > { %v1799_v31 = vmul.f32 1.442695, %v1794_v30 }
 0x57f   : > { %v1792_v32 = vpop.xlane.xlu1 %1791  ;;  %v1789_v33 = vpop.xlane.xlu0 %1788 }
 0x580   : > { %3258 = vpow2.f32 %v1799_v31  ;;  %v1796_v34 = vsub.f32 %v1775_v17, %v1792_v32  ;;  %v1795_v35 = vsub.f32 %v1729_v16, %v1789_v33  ;;  %v2118_v16 = vsel %vm1832_vm3, %v2020_v12, 0 }
 0x582   : > { %v1803_v36 = vmul.f32 1.442695, %v1796_v34  ;;  %v1801_v37 = vmul.f32 1.442695, %v1795_v35 }
 0x584   : > { %3260 = vpow2.f32 %v1803_v36 }
 0x585   : > { %3262 = vpow2.f32 %v1801_v37 }
 0x586   : > { %v3257_v38 = vpop.eup %3256 }
 0x587   : > { %v1805_v39 = vsel %vm1596_vm2, %v3257_v38, 0.0 }
 0x588   : > { %1806 = vadd.xlane.f32.xlu0 %v1805_v39 }
 0x58a   : > { %v3259_v40 = vpop.eup %3258 }
 0x58b   : > { %v1808_v41 = vsel %vm1596_vm2, %v3259_v40, 0.0 }
 0x58c   : > { %1809 = vadd.xlane.f32.xlu1 %v1808_v41 }
 0x58e   : > { %v3261_v42 = vpop.eup %3260 }
 0x58f   : > { %v3263_v43 = vpop.eup %3262  ;;  %v1814_v44 = vsel %vm1596_vm2, %v3261_v42, 0.0 }
 0x590   : > { %1815 = vadd.xlane.f32.xlu1 %v1814_v44  ;;  %v1811_v45 = vsel %vm1596_vm2, %v3263_v43, 0.0 }
 0x591   : > { %1812 = vadd.xlane.f32.xlu0 %v1811_v45 }
 0x615   : > { %v1807_v46 = vpop.xlane.xlu0 %1806 }
 0x616   : > { %3264 = vrcp.f32 %v1807_v46 }
 0x619   : > { %v1810_v47 = vpop.xlane.xlu1 %1809 }
 0x61a   : > { %3266 = vrcp.f32 %v1810_v47 }
 0x61d   : > { %v1816_v50 = vpop.xlane.xlu1 %1815 }
 0x61e   : > { %3268 = vrcp.f32 %v1816_v50  ;;  %v1813_v52 = vpop.xlane.xlu0 %1812  ;;  %v2738_v50 = vld [vmem:[#allocation19] ss:$0 sm:$0xff] }
 0x61f   : > { %3270 = vrcp.f32 %v1813_v52 }
 0x620   : > { %v3265_v53 = vpop.eup %3264 }
 0x621   : > { %v1821_v56 = vmul.f32 %v3265_v53, %v3257_v38 }
 0x623   : > { %v1825_v57 = vpack.c.bf16 %v1821_v56, %v1821_v56 }
 0x624   : > { %v3267_v58 = vpop.eup %3266 }
 0x625   : > { %v1822_v63 = vmul.f32 %v3267_v58, %v3259_v40  ;;  %2946 = vmatmul.mubr.msk.bf16.vlgmr.msra.gmra.mrb[32].mxu0 %vm1596_vm2, %v1825_v57 }
 0x626   : > { %2956 = vmatpush3.bf16.msra.mxu0 %v1926_v59  ;;  %2957 = vmatprep.mubr.msk.bf16.mxu0 %vm3876_vm1, %v3875_v9 }
 0x627   : > { %v1826_v60 = vpack.c.bf16 %v1822_v63, %v1822_v63  ;;  %2967 = vmatprep.subr.bf16.mxu0 %v3875_v9 }
 0x628   : > { %v3269_v1 = vpop.eup %3268 }
 0x629   : > { %v3271_v2 = vpop.eup %3270  ;;  %2952 = vmatmul.mubr.msk.bf16.vlgmr.msra.gmra.mrb[32].mxu1 %vm1596_vm2, %v1826_v60  ;;  %v1824_v5 = vmul.f32 %v3269_v1, %v3261_v42 }
 0x62a   : > { %v1823_v4 = vmul.f32 %v3271_v2, %v3263_v43  ;;  %2962 = vmatpush3.bf16.msra.mxu1 %v1972_v61  ;;  %2963 = vmatprep.mubr.msk.bf16.mxu1 %vm3876_vm1, %v3875_v9  ;;  %v3248_v2 = vld [vmem:[#allocation23] sm:$0xff]   ;;  %v3249_v61 = vld [vmem:[#allocation23 + $0x8] sm:$0xff]  }
 0x62b   : > { %2973 = vmatprep.subr.bf16.mxu1 %v3875_v9  ;;  %v1828_v8 = vpack.c.bf16 %v1824_v5, %v1824_v5 }
 0x62c   : > { %v1827_v6 = vpack.c.bf16 %v1823_v4, %v1823_v4 }
 0x62e   : > { %2958 = vmatmul.mubr.msk.bf16.vlgmr.msra.gmra.mrb[36].mxu0 %vm1596_vm2, %v1827_v6  ;;  %v2739_v6 = vld [vmem:[#allocation20] ss:$0 sm:$0xff] }
 0x62f   : > { %2968 = vmatpush3.bf16.msra.mxu0 %v2026_v7  ;;  %2969 = vmatprep.mubr.msk.bf16.mxu0 %vm3876_vm1, %v3875_v9 }
 0x630   : > { %2979 = vmatprep.subr.bf16.mxu0 %v3875_v9 }
 0x631   : > { %2964 = vmatmul.mubr.msk.bf16.vlgmr.msra.gmra.mrb[36].mxu1 %vm1596_vm2, %v1828_v8  ;;  %v2740_v8 = vld [vmem:[#allocation22] ss:$0 sm:$0xff] }
 0x632   : > { %2975 = vmatprep.mubr.msk.bf16.mxu1 %vm3876_vm1, %v3875_v9  ;;  %2974 = vmatpush3.bf16.msra.mxu1 %v2072_v11 }
 0x633   : > { %2985 = vmatprep.subr.bf16.mxu1 %v3875_v9 }
 0x6f8   : > { %v1870_v13 = vpop.f32.mrb[32].mxu0 }
 0x6f9   : > { %v2014_v14 = vpack.c.bf16 %v1870_v13, %v1870_v13  ;;  %v2947_v15 = vpop.f32.mrb[33].mxu0  ;;  %v3250_v13 = vld [vmem:[#allocation26] sm:$0xff]  }
 0x6fa   : > { %v1873_v17 = vpop.f32.mrb[34].mxu0  ;;  %v3252_v15 = vld [vmem:[#allocation26 + $0x10] sm:$0xff]  }
 0x6fb   : > { %v2948_v19 = vpop.f32.mrb[35].mxu0  ;;  %2970 = vmatmul.mubr.msk.bf16.vlgmr.msra.gmra.mrb[40].mxu0 %vm1596_vm2, %v2014_v14  ;;  %v3251_v14 = vld [vmem:[#allocation26 + $0x8] sm:$0xff]   ;;  %v2741_v17 = vld [vmem:[#allocation25] ss:$0 sm:$0xff] }
 0x6fc   : > { %v1916_v20 = vpop.f32.mrb[32].mxu1  ;;  %2980 = vmatpush3.bf16.msra.mxu0 %v2118_v16  ;;  %2981 = vmatprep.mubr.msk.bf16.mxu0 %vm3876_vm1, %v3875_v9  ;;  %v3253_v16 = vld [vmem:[#allocation26 + $0x18] sm:$0xff]  }
 0x6fd   : > { %v2015_v21 = vpack.c.bf16 %v1916_v20, %v1916_v20  ;;  %v2953_v22 = vpop.f32.mrb[33].mxu1  ;;  %2991 = vmatprep.subr.bf16.mxu0 %v3875_v9 }
 0x6fe   : > { %v1919_v24 = vpop.f32.mrb[34].mxu1 }
 0x6ff   : > { %v2954_v25 = vpop.f32.mrb[35].mxu1  ;;  %2976 = vmatmul.mubr.msk.bf16.vlgmr.msra.gmra.mrb[40].mxu1 %vm1596_vm2, %v2015_v21 }
 0x700   : > { %2986 = vmatpush3.bf16.msra.mxu1 %v2164_v23  ;;  %2987 = vmatprep.mubr.msk.bf16.mxu1 %vm3876_vm1, %v3875_v9 }
 0x701   : > { %v1962_v26 = vpop.f32.mrb[36].mxu0  ;;  %2999 = vmatprep.subr.bf16.mxu1 %v3875_v9 }
 0x702   : > { %v2016_v27 = vpack.c.bf16 %v1962_v26, %v1962_v26  ;;  %v2959_v28 = vpop.f32.mrb[37].mxu0 }
 0x703   : > { %v1965_v29 = vpop.f32.mrb[38].mxu0 }
 0x704   : > { %v2960_v30 = vpop.f32.mrb[39].mxu0  ;;  %2982 = vmatmul.mubr.msk.bf16.vlgmr.msra.gmra.mrb[44].mxu0 %vm1596_vm2, %v2016_v27  ;;  %v2008_v31 = vpop.f32.mrb[36].mxu1 }
 0x705   : > { %v2017_v32 = vpack.c.bf16 %v2008_v31, %v2008_v31  ;;  %v2965_v33 = vpop.f32.mrb[37].mxu1  ;;  %2995 = vmatprep.mubr.msk.bf16.mxu0 %vm3876_vm1, %v3875_v9  ;;  %2992 = vmatpush3.bf16.msra.mxu0 %v3248_v2 }
 0x706   : > { %v2011_v34 = vpop.f32.mrb[38].mxu1  ;;  %2993 = vmatprep.subr.bf16.mxu0 %v3875_v9 }
 0x707   : > { %v2966_v35 = vpop.f32.mrb[39].mxu1  ;;  %2988 = vmatmul.mubr.msk.bf16.vlgmr.msra.gmra.mrb[44].mxu1 %vm1596_vm2, %v2017_v32 }
 0x708   : > { %3007 = vmatprep.mubr.msk.bf16.mxu1 %vm3876_vm1, %v3875_v9  ;;  %3000 = vmatpush3.bf16.msra.mxu1 %v3250_v13 }
 0x709   : > { %2994 = vmatpush3.bf16.msra.mxu0 %v3249_v61  ;;  %3001 = vmatprep.subr.bf16.mxu1 %v3875_v9 }
 0x70c   : > { %3002 = vmatpush3.bf16.msra.mxu1 %v3251_v14 }
 0x70d   : > { %3003 = vmatprep.subr.bf16.mxu1 %v3875_v9 }
 0x710   : > { %3004 = vmatpush3.bf16.msra.mxu1 %v3252_v15 }
 0x711   : > { %3005 = vmatprep.subr.bf16.mxu1 %v3875_v9  ;;  %v2745_v9 = vld [vmem:[#allocation28] ss:$0 sm:$0xff] }
 0x714   : > { %3006 = vmatpush3.bf16.msra.mxu1 %v3253_v16 }
 0x7ce   : > { %v2062_v36 = vpop.f32.mrb[40].mxu0 }
 0x7cf   : > { %v2971_v37 = vpop.f32.mrb[41].mxu0 }
 0x7d0   : > { %v2065_v38 = vpop.f32.mrb[42].mxu0 }
 0x7d1   : > { %v2972_v39 = vpop.f32.mrb[43].mxu0 }
 0x7d2   : > { %v2108_v40 = vpop.f32.mrb[40].mxu1 }
 0x7d3   : > { %v2206_v41 = vadd.f32 %v2108_v40, %v2062_v36  ;;  %v2977_v42 = vpop.f32.mrb[41].mxu1 }
 0x7d4   : > { %v2111_v43 = vpop.f32.mrb[42].mxu1 }
 0x7d5   : > { %v2978_v44 = vpop.f32.mrb[43].mxu1 }
 0x7d7   : > { %v2154_v45 = vpop.f32.mrb[44].mxu0 }
 0x7d8   : > { %v2207_v46 = vadd.f32 %v2206_v41, %v2154_v45  ;;  %v2983_v47 = vpop.f32.mrb[45].mxu0 }
 0x7d9   : > { %v2157_v48 = vpop.f32.mrb[46].mxu0 }
 0x7da   : > { %v2984_v49 = vpop.f32.mrb[47].mxu0  ;;  %v2200_v51 = vpop.f32.mrb[44].mxu1 }
 0x7db   : > { %v2208_v52 = vadd.f32 %v2207_v46, %v2200_v51  ;;  %v2989_v53 = vpop.f32.mrb[45].mxu1 }
 0x7dc   : > { %v2203_v54 = vpop.f32.mrb[46].mxu1 }
 0x7dd   : > { %v2215_v55 = vadd.f32 %v2738_v50, %v2208_v52  ;;  %v2990_v56 = vpop.f32.mrb[47].mxu1 }
 0x7df   : > { %v2216_v57 = vadd.f32 %v2215_v55, %v4493_v0 }
 0x7e1   : > { %v2217_v58 = vsel %vm803_vm0, %v2216_v57, 0.0 }
 0x7e2   : > { %2218 = vadd.xlane.f32.xlu0 %v2217_v58 }
 0x86f   : > { %v2219_v59 = vpop.xlane.xlu0 %2218 }
 0x870   : > { %v2220_v62 = vmul.f32 0.03125, %v2219_v59 }
 0x872   : > { %v2221_v63 = vsub.f32 %v2216_v57, %v2220_v62 }
 0x874   : > { %v2222_v60 = vmul.f32 %v2221_v63, %v2221_v63 }
 0x876   : > { %v2223_v1 = vsel %vm803_vm0, %v2222_v60, 0.0 }
 0x877   : > { %2224 = vadd.xlane.f32.xlu1 %v2223_v1 }
 0x904   : > { %v2225_v3 = vpop.xlane.xlu1 %2224 }
 0x905   : > { %v2226_v4 = vmul.f32 0.03125, %v2225_v3 }
 0x907   : > { %v2227_v5 = vadd.f32 1e-06, %v2226_v4 }
 0x909   : > { %3272 = vrsqrt.f32 %v2227_v5 }
 0x913   : > { %v3273_v0 = vpop.eup %3272 }
 0x914   : > { %v2229_v7 = vmul.f32 %v3273_v0, %v2221_v63 }
 0x916   : > { %v2236_v10 = vmul.f32 %v2739_v6, %v2229_v7 }
 0x918   : > { %v2243_v11 = vadd.f32 %v2740_v8, %v2236_v10 }
 0x91a   : > { %v2244_v12 = vpack.c.bf16 %v2243_v11, %v2243_v11 }
 0x91c   : > { %2996 = vmatmul.mubr.msk.bf16.vlgmr.msra.gmra.mrb[48].mxu0 %vm803_vm0, %v2244_v12 }
 0x9ef   : > { %v2304_v18 = vpop.f32.mrb[48].mxu0 }
 0x9f0   : > { %v2305_v19 = vadd.f32 %v2741_v17, %v2304_v18  ;;  %v2997_v20 = vpop.f32.mrb[49].mxu0 }
 0x9f1   : > { %v2307_v21 = vpop.f32.mrb[50].mxu0 }
 0x9f2   : > { %v2311_v22 = vmul.f32 0.70710677, %v2305_v19  ;;  %v2998_v23 = vpop.f32.mrb[51].mxu0  ;;  %v2310_v25 = vmul.f32 0.5, %v2305_v19 }
 0x9f4   : > { %3274 = verf.f32 %v2311_v22 }
 0x9fe   : > { %v3275_v24 = vpop.eup %3274 }
 0x9ff   : > { %v2313_v26 = vadd.f32 1.0, %v3275_v24 }
 0xa01   : > { %v2314_v27 = vmul.f32 %v2313_v26, %v2310_v25 }
 0xa03   : > { %v2315_v28 = vpack.c.bf16 %v2314_v27, %v2314_v27 }
 0xa05   : > { %3008 = vmatmul.mubr.msk.bf16.vlgmr.msra.gmra.mrb[48].mxu1 %vm2354_vm4, %v2315_v28 }
 0xad8   : > { %v2392_v29 = vpop.f32.mrb[48].mxu1 }
 0xad9   : > { %v2393_v30 = vadd.f32 %v2745_v9, %v2392_v29  ;;  %v3009_v31 = vpop.f32.mrb[49].mxu1 }
 0xada   : > { %v2395_v32 = vpop.f32.mrb[50].mxu1 }
 0xadb   : > { %v2398_v33 = vadd.f32 %v2393_v30, %v2216_v57  ;;  %v3010_v34 = vpop.f32.mrb[51].mxu1 }
 0xadd   : > { %2399 = vst.msk [vmem:[%s781_s23] sm:$0xff] %vm803_vm0, %v2398_v33 }
 0xade   : > { %3767 = shalt.err (!%p3764_p1)
}
 0xadf   : > { %s3768_s28 = scalar_lea.hbm %s4667_s2, 128  ;;  %s3772_s0 = scalar_lea.hbm %s4794_s17, 256 }
 0xae0   : > { %p3769_p13 = scmp.ne.s32.totalorder %s4667_s2, %s3768_s28  ;;  %p3773_p3 = scmp.lt.u32.totalorder %s4667_s2, %s4794_s17 }
 0xae1   : > { %p3774_p10 = scmp.lt.u32.totalorder %s3772_s0, %s3768_s28  ;;  %p3776_p12 = scmp.lt.u32.totalorder %s3768_s28, %s4667_s2 }
 0xae2   : > { %p3770_p0 = pnand %p3769_p13, %p4795_p8 }
 0xae3   : > { %p3775_p11 = por %p3774_p10, %p3773_p3 }
 0xae4   : > { %p3771_p2 = pneg %p3770_p0 }
 0xae5   : > { %p3777_p5 = por %p3776_p12, %p3775_p11 }
 0xae7   : > { %p3778_p7 = pnand %p3777_p5, %p3771_p2 }
 0xae9   : > { %3781 = shalt.err (!%p3778_p7)
}
 0xaea   : > { %3077 = dma.vmem_to_hbm [thread:$0]  (%p4795_p8), %s4669_s1, 128, %s4667_s2, %s2401_s18  }
 0xaeb PF: > { %s4796_s27 = sld [smem:[#allocation40_spill]]  ;;  %s4797_s20 = sld [smem:[#allocation43_spill]] }
 0xaec   : > { %p4798_p6 = scmp.ne.s32.totalorder %s4771_s24, 0 }
 0xaf1   : > { %s2426_s29 = sand.u32 1, %s4796_s27   ;;  %p4799_p9 = scmp.ge.s32.totalorder %s4797_s20, 2 }
 0xaf2   : > { %s2427_s26 = scalar_lea.sflag [#allocation4], %s2426_s29 }
 0xaf3   : > { %p3133_p4 = pnand %p4799_p9, %p4798_p6 }
 0xaf5   : > { %3835 = dma.done.wait (!%p3133_p4), %s2427_s26, 128  }
 0xaf6   : > { %3837 = vsyncadd (!%p3133_p4), %s2427_s26, 4294967168  ;;  %s4800_s24 = sld [smem:[#allocation41_spill]]  ;;  %s4801_s28 = sld [smem:[#allocation42_spill]] }
 0xaf7   : > { %s4802_s23 = smov %s4375_s25  ;;  %p38_p1 = scmp.ge.s32.totalorder %s4375_s25, 4  }
 0xaf8   : > { %s4804_s26 = smov %s4386_s19  ;;  %s4805_s27 = smov %s4802_s23 }
 0xaf9   :  { %40 = sbr.rel (!%p38_p1) target bundleno = 19 (0x13), region = 197 }
 0xafc   : > { %s4803_s25 = smov %s4801_s28 }
 0xb00   :  { %2432 = vsyncpa [#allocation3], 1 }
 0xb01   :  { %2434 = vsyncpa [#allocation3 + $0x1], 1 }
 0xb02   :  { %2435 = vsyncpa [#allocation6], 1 }
 0xb03   :  { %2436 = vsyncpa [#allocation9], 1 }
 0xb04   :  { %2437 = vsyncpa [#allocation12], 1 }
 0xb05   :  { %2438 = vsyncpa [#allocation15], 1 }
 0xb06   :  { %2439 = vsyncpa [#allocation18], 1 }
 0xb07   :  { %2440 = vsyncpa [#allocation21], 1 }
 0xb08   :  { %2441 = vsyncpa [#allocation24], 1 }
 0xb09   :  { %2442 = vsyncpa [#allocation27], 1 }
 0xb0a   :  { %2443 = vsyncpa [#allocation4], 1 }
 0xb0b   :  { %2445 = vsyncpa [#allocation4 + $0x1], 1 }

</bundles_post_ra>
